<compile_context>
chip_gen: v5e
topology: v5e:2x2
jax: 0.10.0
libtpu: 0.0.40
codegen_flags: <defaults>
</compile_context>

<pallas_src>
import math
import functools

import jax
import jax.numpy as jnp
from jax.experimental import pallas as pl
from jax.experimental.pallas import tpu as pltpu

_MASK_BIAS = -1e30  # large finite negative: masked scores underflow to 0 after softmax


# ----------------------------------------------------------------------------
# Fused decoder-layer kernel: one grid step == one batch element.
# ----------------------------------------------------------------------------
def _decoder_layer_kernel(
    x_ref, enc_ref, sbias_ref, cbias_ref,
    wqkv1_ref, wo1_ref, g1_ref, b1_ref,
    wq2_ref, wkv2_ref, wo2_ref, g2_ref, b2_ref,
    wf1_ref, bf1_ref, wf2_ref, bf2_ref,
    o_ref, sw_ref, cw_ref,
    *, num_heads, head_dim, eps):
    f32 = jnp.float32
    # contract last axis of both operands -> no in-kernel transposes
    cdims = (((1,), (1,)), ((), ()))
    scale = 1.0 / math.sqrt(head_dim)
    embed_dim = num_heads * head_dim

    x = x_ref[0]          # (T, E)
    enc = enc_ref[0]      # (S, E)

    def layer_norm(z, g_ref, b_ref):
        mu = jnp.mean(z, axis=-1, keepdims=True)
        var = jnp.mean((z - mu) ** 2, axis=-1, keepdims=True)
        return (z - mu) * jax.lax.rsqrt(var + eps) * g_ref[...] + b_ref[...]

    def attention(q, k, v, bias, wo, w_ref):
        # q: (Tq, E), k/v: (Tk, E), bias broadcastable to (Tq, Tk), wo: (E, E)
        ctx = jnp.zeros((q.shape[0], embed_dim), f32)
        for h in range(num_heads):                       # static unroll (H small)
            sl = slice(h * head_dim, (h + 1) * head_dim)
            qh = q[:, sl] * scale                        # scale folded into q
            kh = k[:, sl]
            vh = v[:, sl]
            s = jax.lax.dot_general(qh, kh, cdims,
                                    preferred_element_type=f32) + bias
            m = jnp.max(s, axis=-1, keepdims=True)
            e = jnp.exp(s - m)
            den = jnp.sum(e, axis=-1, keepdims=True)
            w = e * pl.reciprocal(den, approx=True)      # divide -> EUP slot
            w_ref[0, h] = w                              # per-head attention weights
            oh = jnp.dot(w, vh, preferred_element_type=f32)      # (Tq, Dh)
            # fold head-concat into the output projection:
            #   out = sum_h  oh @ Wo[:, h*Dh:(h+1)*Dh]^T
            ctx = ctx + jax.lax.dot_general(oh, wo[:, sl], cdims,
                                            preferred_element_type=f32)
        return ctx

    # ---------------- self attention + residual + LayerNorm1 ----------------
    qkv = jax.lax.dot_general(x, wqkv1_ref[...], cdims, preferred_element_type=f32)
    q1 = qkv[:, :embed_dim]
    k1 = qkv[:, embed_dim:2 * embed_dim]
    v1 = qkv[:, 2 * embed_dim:]
    sa = attention(q1, k1, v1, sbias_ref[...], wo1_ref[...], sw_ref)
    out1 = layer_norm(x + sa, g1_ref, b1_ref)

    # ---------------- cross attention + residual + LayerNorm2 ---------------
    q2 = jax.lax.dot_general(out1, wq2_ref[...], cdims, preferred_element_type=f32)
    kv = jax.lax.dot_general(enc, wkv2_ref[...], cdims, preferred_element_type=f32)
    k2 = kv[:, :embed_dim]
    v2 = kv[:, embed_dim:]
    ca = attention(q2, k2, v2, cbias_ref[0], wo2_ref[...], cw_ref)
    out2 = layer_norm(out1 + ca, g2_ref, b2_ref)

    # ---------------- position-wise FFN + residual + LayerNorm ---------------
    h = jax.lax.dot_general(out2, wf1_ref[...], cdims,
                            preferred_element_type=f32) + bf1_ref[...]
    h = jnp.maximum(h, 0.0)
    f = jax.lax.dot_general(h, wf2_ref[...], cdims,
                            preferred_element_type=f32) + bf2_ref[...]
    # NOTE: reference module reuses layernorm2 here (reproduced intentionally).
    out3 = layer_norm(f + out2, g2_ref, b2_ref)

    o_ref[0] = out3.astype(o_ref.dtype)


# ----------------------------------------------------------------------------
# Wrapper: layout plumbing + single pallas_call
# ----------------------------------------------------------------------------
def decoder_layer(X, enc_output, attn_mask, key_padding_mask, params, num_heads):
    t, b, e = X.shape
    s = enc_output.shape[0]
    head_dim = e // num_heads

    # Seq-first [L,B,E] -> batch-first [B,L,E] once at the boundary; everything
    # else stays inside one fused kernel (no per-MHA head-split transposes).
    xb = jnp.transpose(X, (1, 0, 2)).astype(jnp.float32)
    encb = jnp.transpose(enc_output, (1, 0, 2)).astype(jnp.float32)

    # Additive mask biases (finite, so fully-masked rows cannot NaN).
    if attn_mask is None:
        self_bias = jnp.zeros((t, t), jnp.float32)
    else:
        self_bias = attn_mask.astype(jnp.float32) * _MASK_BIAS
    if key_padding_mask is None:
        cross_bias = jnp.zeros((b, 1, s), jnp.float32)
    else:
        cross_bias = key_padding_mask.astype(jnp.float32)[:, None, :] * _MASK_BIAS

    m1, m2 = params["mha1"], params["mha2"]
    wqkv1 = jnp.concatenate([m1["Wq"], m1["Wk"], m1["Wv"]], axis=0)   # (3E, E)
    wkv2 = jnp.concatenate([m2["Wk"], m2["Wv"]], axis=0)              # (2E, E)

    row = lambda v: v.reshape(1, e)
    const2 = lambda shape: pl.BlockSpec(shape, lambda i: (0, 0))      # resident weights

    kernel = functools.partial(_decoder_layer_kernel, num_heads=num_heads,
                               head_dim=head_dim, eps=1e-5)

    out3_bt, self_w, cross_w = pl.pallas_call(
        kernel,
        grid=(b,),
        in_specs=[
            pl.BlockSpec((1, t, e), lambda i: (i, 0, 0)),   # x (per-batch slice)
            pl.BlockSpec((1, s, e), lambda i: (i, 0, 0)),   # enc_output
            const2((t, t)),                                 # self-attn additive bias
            pl.BlockSpec((1, 1, s), lambda i: (i, 0, 0)),   # key-padding additive bias
            const2((3 * e, e)),                             # fused Wq|Wk|Wv (self)
            const2((e, e)),                                 # Wo (self)
            const2((1, e)), const2((1, e)),                 # ln1 gamma/beta
            const2((e, e)),                                 # Wq (cross)
            const2((2 * e, e)),                             # fused Wk|Wv (cross)
            const2((e, e)),                                 # Wo (cross)
            const2((1, e)), const2((1, e)),                 # ln2 gamma/beta
            const2((e, e)), const2((1, e)),                 # ffn dense1 W,b
            const2((e, e)), const2((1, e)),                 # ffn dense2 W,b
        ],
        out_specs=(
            pl.BlockSpec((1, t, e), lambda i: (i, 0, 0)),
            pl.BlockSpec((1, num_heads, t, t), lambda i: (i, 0, 0, 0)),
            pl.BlockSpec((1, num_heads, t, s), lambda i: (i, 0, 0, 0)),
        ),
        out_shape=(
            jax.ShapeDtypeStruct((b, t, e), jnp.float32),
            jax.ShapeDtypeStruct((b, num_heads, t, t), jnp.float32),
            jax.ShapeDtypeStruct((b, num_heads, t, s), jnp.float32),
        ),
        compiler_params=pltpu.CompilerParams(
            dimension_semantics=("parallel",)),
    )(xb, encb, self_bias, cross_bias,
      wqkv1, m1["Wo"], row(params["ln1_w"]), row(params["ln1_b"]),
      m2["Wq"], wkv2, m2["Wo"], row(params["ln2_w"]), row(params["ln2_b"]),
      params["ffn_w1"], row(params["ffn_b1"]),
      params["ffn_w2"], row(params["ffn_b2"]))

    out3 = jnp.transpose(out3_bt, (1, 0, 2))   # back to [T, B, E]
    return out3, self_w, cross_w


# ----------------------------------------------------------------------------
# Deterministic parameter construction (torch.nn.Linear-style init/layout)
# ----------------------------------------------------------------------------
def make_params(key, embed_dim):
    def lin(k, shape):
        bound = 1.0 / math.sqrt(shape[-1])
        return jax.random.uniform(k, shape, jnp.float32, -bound, bound)

    keys = jax.random.split(key, 12)
    mha1 = {"Wq": lin(keys[0], (embed_dim, embed_dim)),
            "Wk": lin(keys[1], (embed_dim, embed_dim)),
            "Wv": lin(keys[2], (embed_dim, embed_dim)),
            "Wo": lin(keys[3], (embed_dim, embed_dim))}
    mha2 = {"Wq": lin(keys[4], (embed_dim, embed_dim)),
            "Wk": lin(keys[5], (embed_dim, embed_dim)),
            "Wv": lin(keys[6], (embed_dim, embed_dim)),
            "Wo": lin(keys[7], (embed_dim, embed_dim))}
    params = {
        "mha1": mha1,
        "mha2": mha2,
        "ffn_w1": lin(keys[8], (embed_dim, embed_dim)),
        "ffn_b1": lin(keys[9], (embed_dim,)),
        "ffn_w2": lin(keys[10], (embed_dim, embed_dim)),
        "ffn_b2": lin(keys[11], (embed_dim,)),
        "ln1_w": jnp.ones((embed_dim,), jnp.float32),
        "ln1_b": jnp.zeros((embed_dim,), jnp.float32),
        "ln2_w": jnp.ones((embed_dim,), jnp.float32),
        "ln2_b": jnp.zeros((embed_dim,), jnp.float32),
        "ln3_w": jnp.ones((embed_dim,), jnp.float32),   # unused (module bug reproduced)
        "ln3_b": jnp.zeros((embed_dim,), jnp.float32),
    }
    return params


# ----------------------------------------------------------------------------
if __name__ == "__main__":
    EMBED_DIM = 32
    NUM_HEADS = 4
    TGT_LEN = 8
    SRC_LEN = 16
    BATCH = 2

    root = jax.random.PRNGKey(0)
    k_x, k_enc, k_p = jax.random.split(root, 3)

    X = jax.random.normal(k_x, (TGT_LEN, BATCH, EMBED_DIM), jnp.float32)
    enc_output = jax.random.normal(k_enc, (SRC_LEN, BATCH, EMBED_DIM), jnp.float32)

    # causal look-ahead mask (1 => mask out)
    attn_mask = jnp.triu(jnp.ones((TGT_LEN, TGT_LEN), jnp.float32), k=1)
    # pad out the last 3 source positions of batch element 1
    key_padding_mask = jnp.zeros((BATCH, SRC_LEN), jnp.bool_)
    key_padding_mask = key_padding_mask.at[1, SRC_LEN - 3:].set(True)

    params = make_params(k_p, EMBED_DIM)

    fwd = jax.jit(functools.partial(decoder_layer, num_heads=NUM_HEADS))
    out3, self_w, cross_w = fwd(X, enc_output, attn_mask, key_padding_mask, params)
    jax.block_until_ready((out3, self_w, cross_w))

    assert out3.shape == (TGT_LEN, BATCH, EMBED_DIM)
    assert self_w.shape == (BATCH, NUM_HEADS, TGT_LEN, TGT_LEN)
    assert cross_w.shape == (BATCH, NUM_HEADS, TGT_LEN, SRC_LEN)
    assert bool(jnp.all(jnp.isfinite(out3)))
    print("KERNEL_OK")
</pallas_src>

<mosaic_0001>
module attributes {stable_mosaic.version = 11 : i64} {
  func.func @_decoder_layer_kernel(%arg0: i32, %arg1: memref<1x8x32xf32, #tpu.memory_space<vmem>>, %arg2: memref<1x16x32xf32, #tpu.memory_space<vmem>>, %arg3: memref<8x8xf32, #tpu.memory_space<vmem>>, %arg4: memref<1x1x16xf32, #tpu.memory_space<vmem>>, %arg5: memref<96x32xf32, #tpu.memory_space<vmem>>, %arg6: memref<32x32xf32, #tpu.memory_space<vmem>>, %arg7: memref<1x32xf32, #tpu.memory_space<vmem>>, %arg8: memref<1x32xf32, #tpu.memory_space<vmem>>, %arg9: memref<32x32xf32, #tpu.memory_space<vmem>>, %arg10: memref<64x32xf32, #tpu.memory_space<vmem>>, %arg11: memref<32x32xf32, #tpu.memory_space<vmem>>, %arg12: memref<1x32xf32, #tpu.memory_space<vmem>>, %arg13: memref<1x32xf32, #tpu.memory_space<vmem>>, %arg14: memref<32x32xf32, #tpu.memory_space<vmem>>, %arg15: memref<1x32xf32, #tpu.memory_space<vmem>>, %arg16: memref<32x32xf32, #tpu.memory_space<vmem>>, %arg17: memref<1x32xf32, #tpu.memory_space<vmem>>, %arg18: memref<1x8x32xf32, #tpu.memory_space<vmem>>, %arg19: memref<1x4x8x8xf32, #tpu.memory_space<vmem>>, %arg20: memref<1x4x8x16xf32, #tpu.memory_space<vmem>>) attributes {dimension_semantics = [#tpu.dimension_semantics<parallel>], iteration_bounds = array<i64: 2>, scalar_prefetch = 0 : i64, scratch_operands = 0 : i64, tpu.core_type = #tpu.core_type<tc>, window_params = [{transform_indices = @transform_0, window_bounds = array<i64: 1, 8, 32>}, {transform_indices = @transform_1, window_bounds = array<i64: 1, 16, 32>}, {pipeline_mode = #tpu.pipeline_mode<synchronous>, transform_indices = @transform_2, window_bounds = array<i64: 8, 8>}, {transform_indices = @transform_3, window_bounds = array<i64: 1, 1, 16>}, {pipeline_mode = #tpu.pipeline_mode<synchronous>, transform_indices = @transform_4, window_bounds = array<i64: 96, 32>}, {pipeline_mode = #tpu.pipeline_mode<synchronous>, transform_indices = @transform_5, window_bounds = array<i64: 32, 32>}, {pipeline_mode = #tpu.pipeline_mode<synchronous>, transform_indices = @transform_6, window_bounds = array<i64: 1, 32>}, {pipeline_mode = #tpu.pipeline_mode<synchronous>, transform_indices = @transform_7, window_bounds = array<i64: 1, 32>}, {pipeline_mode = #tpu.pipeline_mode<synchronous>, transform_indices = @transform_8, window_bounds = array<i64: 32, 32>}, {pipeline_mode = #tpu.pipeline_mode<synchronous>, transform_indices = @transform_9, window_bounds = array<i64: 64, 32>}, {pipeline_mode = #tpu.pipeline_mode<synchronous>, transform_indices = @transform_10, window_bounds = array<i64: 32, 32>}, {pipeline_mode = #tpu.pipeline_mode<synchronous>, transform_indices = @transform_11, window_bounds = array<i64: 1, 32>}, {pipeline_mode = #tpu.pipeline_mode<synchronous>, transform_indices = @transform_12, window_bounds = array<i64: 1, 32>}, {pipeline_mode = #tpu.pipeline_mode<synchronous>, transform_indices = @transform_13, window_bounds = array<i64: 32, 32>}, {pipeline_mode = #tpu.pipeline_mode<synchronous>, transform_indices = @transform_14, window_bounds = array<i64: 1, 32>}, {pipeline_mode = #tpu.pipeline_mode<synchronous>, transform_indices = @transform_15, window_bounds = array<i64: 32, 32>}, {pipeline_mode = #tpu.pipeline_mode<synchronous>, transform_indices = @transform_16, window_bounds = array<i64: 1, 32>}, {transform_indices = @transform_17, window_bounds = array<i64: 1, 8, 32>}, {transform_indices = @transform_18, window_bounds = array<i64: 1, 4, 8, 8>}, {transform_indices = @transform_19, window_bounds = array<i64: 1, 4, 8, 16>}]} {
    %c0 = arith.constant 0 : index
    %c0_0 = arith.constant 0 : index
    %c0_1 = arith.constant 0 : index
    %0 = vector.load %arg1[%c0, %c0_0, %c0_1] : memref<1x8x32xf32, #tpu.memory_space<vmem>>, vector<1x8x32xf32>
    %1 = vector.shape_cast %0 : vector<1x8x32xf32> to vector<8x32xf32>
    %c0_2 = arith.constant 0 : index
    %c0_3 = arith.constant 0 : index
    %c0_4 = arith.constant 0 : index
    %2 = vector.load %arg2[%c0_2, %c0_3, %c0_4] : memref<1x16x32xf32, #tpu.memory_space<vmem>>, vector<1x16x32xf32>
    %3 = vector.shape_cast %2 : vector<1x16x32xf32> to vector<16x32xf32>
    %c0_5 = arith.constant 0 : index
    %c0_6 = arith.constant 0 : index
    %4 = vector.load %arg5[%c0_5, %c0_6] : memref<96x32xf32, #tpu.memory_space<vmem>>, vector<96x32xf32>
    %cst = arith.constant dense<0.000000e+00> : vector<8x96xf32>
    %5 = tpu.matmul %1, %4, %cst {dimension_numbers = #tpu.dot_dimension_numbers<[1], [1], [0], [0], [0, 0, 1, 0], [], []>} : vector<8x32xf32>, vector<96x32xf32>, vector<8x96xf32> -> vector<8x96xf32>
    %6 = vector.extract_strided_slice %5 {offsets = [0, 0], sizes = [8, 32], strides = [1, 1]} : vector<8x96xf32> to vector<8x32xf32>
    %7 = vector.extract_strided_slice %5 {offsets = [0, 32], sizes = [8, 32], strides = [1, 1]} : vector<8x96xf32> to vector<8x32xf32>
    %8 = vector.extract_strided_slice %5 {offsets = [0, 64], sizes = [8, 32], strides = [1, 1]} : vector<8x96xf32> to vector<8x32xf32>
    %c0_7 = arith.constant 0 : index
    %c0_8 = arith.constant 0 : index
    %9 = vector.load %arg3[%c0_7, %c0_8] : memref<8x8xf32, #tpu.memory_space<vmem>>, vector<8x8xf32>
    %c0_9 = arith.constant 0 : index
    %c0_10 = arith.constant 0 : index
    %10 = vector.load %arg6[%c0_9, %c0_10] : memref<32x32xf32, #tpu.memory_space<vmem>>, vector<32x32xf32>
    %cst_11 = arith.constant 0.000000e+00 : f32
    %11 = vector.broadcast %cst_11 : f32 to vector<8x32xf32>
    %12 = vector.extract_strided_slice %6 {offsets = [0, 0], sizes = [8, 8], strides = [1, 1]} : vector<8x32xf32> to vector<8x8xf32>
    %cst_12 = arith.constant 0.353553385 : f32
    %13 = vector.broadcast %cst_12 : f32 to vector<8x8xf32>
    %14 = arith.mulf %12, %13 : vector<8x8xf32>
    %15 = vector.extract_strided_slice %7 {offsets = [0, 0], sizes = [8, 8], strides = [1, 1]} : vector<8x32xf32> to vector<8x8xf32>
    %16 = vector.extract_strided_slice %8 {offsets = [0, 0], sizes = [8, 8], strides = [1, 1]} : vector<8x32xf32> to vector<8x8xf32>
    %cst_13 = arith.constant dense<0.000000e+00> : vector<8x8xf32>
    %17 = tpu.matmul %14, %15, %cst_13 {dimension_numbers = #tpu.dot_dimension_numbers<[1], [1], [0], [0], [0, 0, 1, 0], [], []>} : vector<8x8xf32>, vector<8x8xf32>, vector<8x8xf32> -> vector<8x8xf32>
    %18 = arith.addf %17, %9 : vector<8x8xf32>
    %cst_14 = arith.constant dense<0xFF800000> : vector<8xf32>
    %19 = vector.multi_reduction <maximumf>, %18, %cst_14 [1] : vector<8x8xf32> to vector<8xf32>
    %20 = vector.shape_cast %19 : vector<8xf32> to vector<8x1xf32>
    %21 = vector.broadcast %20 : vector<8x1xf32> to vector<8x8xf32>
    %22 = arith.subf %18, %21 : vector<8x8xf32>
    %23 = math.exp %22 : vector<8x8xf32>
    %cst_15 = arith.constant dense<0.000000e+00> : vector<8xf32>
    %24 = vector.multi_reduction <add>, %23, %cst_15 [1] : vector<8x8xf32> to vector<8xf32>
    %25 = vector.shape_cast %24 : vector<8xf32> to vector<8x1xf32>
    %26 = tpu.reciprocal %25 {approx = true} : vector<8x1xf32> -> vector<8x1xf32>
    %27 = vector.broadcast %26 : vector<8x1xf32> to vector<8x8xf32>
    %28 = arith.mulf %23, %27 : vector<8x8xf32>
    %c0_16 = arith.constant 0 : index
    %c0_17 = arith.constant 0 : index
    %c0_18 = arith.constant 0 : index
    %c0_19 = arith.constant 0 : index
    %29 = vector.load %arg19[%c0_16, %c0_17, %c0_18, %c0_19] : memref<1x4x8x8xf32, #tpu.memory_space<vmem>>, vector<1x1x8x8xf32>
    %30 = vector.shape_cast %29 : vector<1x1x8x8xf32> to vector<8x8xf32>
    %31 = vector.shape_cast %28 : vector<8x8xf32> to vector<1x1x8x8xf32>
    tpu.vector_store %arg19[%c0_16, %c0_17, %c0_18, %c0_19], %31 {strides = array<i32>} : memref<1x4x8x8xf32, #tpu.memory_space<vmem>>, vector<1x1x8x8xf32>,
    %cst_20 = arith.constant dense<0.000000e+00> : vector<8x8xf32>
    %32 = tpu.matmul %28, %16, %cst_20 {dimension_numbers = #tpu.dot_dimension_numbers<[1], [0], [0], [1], [0, 0, 1, 1], [], []>} : vector<8x8xf32>, vector<8x8xf32>, vector<8x8xf32> -> vector<8x8xf32>
    %33 = vector.extract_strided_slice %10 {offsets = [0, 0], sizes = [32, 8], strides = [1, 1]} : vector<32x32xf32> to vector<32x8xf32>
    %cst_21 = arith.constant dense<0.000000e+00> : vector<8x32xf32>
    %34 = tpu.matmul %32, %33, %cst_21 {dimension_numbers = #tpu.dot_dimension_numbers<[1], [1], [0], [0], [0, 0, 1, 0], [], []>} : vector<8x8xf32>, vector<32x8xf32>, vector<8x32xf32> -> vector<8x32xf32>
    %35 = arith.addf %11, %34 : vector<8x32xf32>
    %36 = vector.extract_strided_slice %6 {offsets = [0, 8], sizes = [8, 8], strides = [1, 1]} : vector<8x32xf32> to vector<8x8xf32>
    %cst_22 = arith.constant 0.353553385 : f32
    %37 = vector.broadcast %cst_22 : f32 to vector<8x8xf32>
    %38 = arith.mulf %36, %37 : vector<8x8xf32>
    %39 = vector.extract_strided_slice %7 {offsets = [0, 8], sizes = [8, 8], strides = [1, 1]} : vector<8x32xf32> to vector<8x8xf32>
    %40 = vector.extract_strided_slice %8 {offsets = [0, 8], sizes = [8, 8], strides = [1, 1]} : vector<8x32xf32> to vector<8x8xf32>
    %cst_23 = arith.constant dense<0.000000e+00> : vector<8x8xf32>
    %41 = tpu.matmul %38, %39, %cst_23 {dimension_numbers = #tpu.dot_dimension_numbers<[1], [1], [0], [0], [0, 0, 1, 0], [], []>} : vector<8x8xf32>, vector<8x8xf32>, vector<8x8xf32> -> vector<8x8xf32>
    %42 = arith.addf %41, %9 : vector<8x8xf32>
    %cst_24 = arith.constant dense<0xFF800000> : vector<8xf32>
    %43 = vector.multi_reduction <maximumf>, %42, %cst_24 [1] : vector<8x8xf32> to vector<8xf32>
    %44 = vector.shape_cast %43 : vector<8xf32> to vector<8x1xf32>
    %45 = vector.broadcast %44 : vector<8x1xf32> to vector<8x8xf32>
    %46 = arith.subf %42, %45 : vector<8x8xf32>
    %47 = math.exp %46 : vector<8x8xf32>
    %cst_25 = arith.constant dense<0.000000e+00> : vector<8xf32>
    %48 = vector.multi_reduction <add>, %47, %cst_25 [1] : vector<8x8xf32> to vector<8xf32>
    %49 = vector.shape_cast %48 : vector<8xf32> to vector<8x1xf32>
    %50 = tpu.reciprocal %49 {approx = true} : vector<8x1xf32> -> vector<8x1xf32>
    %51 = vector.broadcast %50 : vector<8x1xf32> to vector<8x8xf32>
    %52 = arith.mulf %47, %51 : vector<8x8xf32>
    %c0_26 = arith.constant 0 : index
    %c1 = arith.constant 1 : index
    %c0_27 = arith.constant 0 : index
    %c0_28 = arith.constant 0 : index
    %53 = vector.load %arg19[%c0_26, %c1, %c0_27, %c0_28] : memref<1x4x8x8xf32, #tpu.memory_space<vmem>>, vector<1x1x8x8xf32>
    %54 = vector.shape_cast %53 : vector<1x1x8x8xf32> to vector<8x8xf32>
    %55 = vector.shape_cast %52 : vector<8x8xf32> to vector<1x1x8x8xf32>
    tpu.vector_store %arg19[%c0_26, %c1, %c0_27, %c0_28], %55 {strides = array<i32>} : memref<1x4x8x8xf32, #tpu.memory_space<vmem>>, vector<1x1x8x8xf32>,
    %cst_29 = arith.constant dense<0.000000e+00> : vector<8x8xf32>
    %56 = tpu.matmul %52, %40, %cst_29 {dimension_numbers = #tpu.dot_dimension_numbers<[1], [0], [0], [1], [0, 0, 1, 1], [], []>} : vector<8x8xf32>, vector<8x8xf32>, vector<8x8xf32> -> vector<8x8xf32>
    %57 = vector.extract_strided_slice %10 {offsets = [0, 8], sizes = [32, 8], strides = [1, 1]} : vector<32x32xf32> to vector<32x8xf32>
    %cst_30 = arith.constant dense<0.000000e+00> : vector<8x32xf32>
    %58 = tpu.matmul %56, %57, %cst_30 {dimension_numbers = #tpu.dot_dimension_numbers<[1], [1], [0], [0], [0, 0, 1, 0], [], []>} : vector<8x8xf32>, vector<32x8xf32>, vector<8x32xf32> -> vector<8x32xf32>
    %59 = arith.addf %35, %58 : vector<8x32xf32>
    %60 = vector.extract_strided_slice %6 {offsets = [0, 16], sizes = [8, 8], strides = [1, 1]} : vector<8x32xf32> to vector<8x8xf32>
    %cst_31 = arith.constant 0.353553385 : f32
    %61 = vector.broadcast %cst_31 : f32 to vector<8x8xf32>
    %62 = arith.mulf %60, %61 : vector<8x8xf32>
    %63 = vector.extract_strided_slice %7 {offsets = [0, 16], sizes = [8, 8], strides = [1, 1]} : vector<8x32xf32> to vector<8x8xf32>
    %64 = vector.extract_strided_slice %8 {offsets = [0, 16], sizes = [8, 8], strides = [1, 1]} : vector<8x32xf32> to vector<8x8xf32>
    %cst_32 = arith.constant dense<0.000000e+00> : vector<8x8xf32>
    %65 = tpu.matmul %62, %63, %cst_32 {dimension_numbers = #tpu.dot_dimension_numbers<[1], [1], [0], [0], [0, 0, 1, 0], [], []>} : vector<8x8xf32>, vector<8x8xf32>, vector<8x8xf32> -> vector<8x8xf32>
    %66 = arith.addf %65, %9 : vector<8x8xf32>
    %cst_33 = arith.constant dense<0xFF800000> : vector<8xf32>
    %67 = vector.multi_reduction <maximumf>, %66, %cst_33 [1] : vector<8x8xf32> to vector<8xf32>
    %68 = vector.shape_cast %67 : vector<8xf32> to vector<8x1xf32>
    %69 = vector.broadcast %68 : vector<8x1xf32> to vector<8x8xf32>
    %70 = arith.subf %66, %69 : vector<8x8xf32>
    %71 = math.exp %70 : vector<8x8xf32>
    %cst_34 = arith.constant dense<0.000000e+00> : vector<8xf32>
    %72 = vector.multi_reduction <add>, %71, %cst_34 [1] : vector<8x8xf32> to vector<8xf32>
    %73 = vector.shape_cast %72 : vector<8xf32> to vector<8x1xf32>
    %74 = tpu.reciprocal %73 {approx = true} : vector<8x1xf32> -> vector<8x1xf32>
    %75 = vector.broadcast %74 : vector<8x1xf32> to vector<8x8xf32>
    %76 = arith.mulf %71, %75 : vector<8x8xf32>
    %c0_35 = arith.constant 0 : index
    %c2 = arith.constant 2 : index
    %c0_36 = arith.constant 0 : index
    %c0_37 = arith.constant 0 : index
    %77 = vector.load %arg19[%c0_35, %c2, %c0_36, %c0_37] : memref<1x4x8x8xf32, #tpu.memory_space<vmem>>, vector<1x1x8x8xf32>
    %78 = vector.shape_cast %77 : vector<1x1x8x8xf32> to vector<8x8xf32>
    %79 = vector.shape_cast %76 : vector<8x8xf32> to vector<1x1x8x8xf32>
    tpu.vector_store %arg19[%c0_35, %c2, %c0_36, %c0_37], %79 {strides = array<i32>} : memref<1x4x8x8xf32, #tpu.memory_space<vmem>>, vector<1x1x8x8xf32>,
    %cst_38 = arith.constant dense<0.000000e+00> : vector<8x8xf32>
    %80 = tpu.matmul %76, %64, %cst_38 {dimension_numbers = #tpu.dot_dimension_numbers<[1], [0], [0], [1], [0, 0, 1, 1], [], []>} : vector<8x8xf32>, vector<8x8xf32>, vector<8x8xf32> -> vector<8x8xf32>
    %81 = vector.extract_strided_slice %10 {offsets = [0, 16], sizes = [32, 8], strides = [1, 1]} : vector<32x32xf32> to vector<32x8xf32>
    %cst_39 = arith.constant dense<0.000000e+00> : vector<8x32xf32>
    %82 = tpu.matmul %80, %81, %cst_39 {dimension_numbers = #tpu.dot_dimension_numbers<[1], [1], [0], [0], [0, 0, 1, 0], [], []>} : vector<8x8xf32>, vector<32x8xf32>, vector<8x32xf32> -> vector<8x32xf32>
    %83 = arith.addf %59, %82 : vector<8x32xf32>
    %84 = vector.extract_strided_slice %6 {offsets = [0, 24], sizes = [8, 8], strides = [1, 1]} : vector<8x32xf32> to vector<8x8xf32>
    %cst_40 = arith.constant 0.353553385 : f32
    %85 = vector.broadcast %cst_40 : f32 to vector<8x8xf32>
    %86 = arith.mulf %84, %85 : vector<8x8xf32>
    %87 = vector.extract_strided_slice %7 {offsets = [0, 24], sizes = [8, 8], strides = [1, 1]} : vector<8x32xf32> to vector<8x8xf32>
    %88 = vector.extract_strided_slice %8 {offsets = [0, 24], sizes = [8, 8], strides = [1, 1]} : vector<8x32xf32> to vector<8x8xf32>
    %cst_41 = arith.constant dense<0.000000e+00> : vector<8x8xf32>
    %89 = tpu.matmul %86, %87, %cst_41 {dimension_numbers = #tpu.dot_dimension_numbers<[1], [1], [0], [0], [0, 0, 1, 0], [], []>} : vector<8x8xf32>, vector<8x8xf32>, vector<8x8xf32> -> vector<8x8xf32>
    %90 = arith.addf %89, %9 : vector<8x8xf32>
    %cst_42 = arith.constant dense<0xFF800000> : vector<8xf32>
    %91 = vector.multi_reduction <maximumf>, %90, %cst_42 [1] : vector<8x8xf32> to vector<8xf32>
    %92 = vector.shape_cast %91 : vector<8xf32> to vector<8x1xf32>
    %93 = vector.broadcast %92 : vector<8x1xf32> to vector<8x8xf32>
    %94 = arith.subf %90, %93 : vector<8x8xf32>
    %95 = math.exp %94 : vector<8x8xf32>
    %cst_43 = arith.constant dense<0.000000e+00> : vector<8xf32>
    %96 = vector.multi_reduction <add>, %95, %cst_43 [1] : vector<8x8xf32> to vector<8xf32>
    %97 = vector.shape_cast %96 : vector<8xf32> to vector<8x1xf32>
    %98 = tpu.reciprocal %97 {approx = true} : vector<8x1xf32> -> vector<8x1xf32>
    %99 = vector.broadcast %98 : vector<8x1xf32> to vector<8x8xf32>
    %100 = arith.mulf %95, %99 : vector<8x8xf32>
    %c0_44 = arith.constant 0 : index
    %c3 = arith.constant 3 : index
    %c0_45 = arith.constant 0 : index
    %c0_46 = arith.constant 0 : index
    %101 = vector.load %arg19[%c0_44, %c3, %c0_45, %c0_46] : memref<1x4x8x8xf32, #tpu.memory_space<vmem>>, vector<1x1x8x8xf32>
    %102 = vector.shape_cast %101 : vector<1x1x8x8xf32> to vector<8x8xf32>
    %103 = vector.shape_cast %100 : vector<8x8xf32> to vector<1x1x8x8xf32>
    tpu.vector_store %arg19[%c0_44, %c3, %c0_45, %c0_46], %103 {strides = array<i32>} : memref<1x4x8x8xf32, #tpu.memory_space<vmem>>, vector<1x1x8x8xf32>,
    %cst_47 = arith.constant dense<0.000000e+00> : vector<8x8xf32>
    %104 = tpu.matmul %100, %88, %cst_47 {dimension_numbers = #tpu.dot_dimension_numbers<[1], [0], [0], [1], [0, 0, 1, 1], [], []>} : vector<8x8xf32>, vector<8x8xf32>, vector<8x8xf32> -> vector<8x8xf32>
    %105 = vector.extract_strided_slice %10 {offsets = [0, 24], sizes = [32, 8], strides = [1, 1]} : vector<32x32xf32> to vector<32x8xf32>
    %cst_48 = arith.constant dense<0.000000e+00> : vector<8x32xf32>
    %106 = tpu.matmul %104, %105, %cst_48 {dimension_numbers = #tpu.dot_dimension_numbers<[1], [1], [0], [0], [0, 0, 1, 0], [], []>} : vector<8x8xf32>, vector<32x8xf32>, vector<8x32xf32> -> vector<8x32xf32>
    %107 = arith.addf %83, %106 : vector<8x32xf32>
    %108 = arith.addf %1, %107 : vector<8x32xf32>
    %cst_49 = arith.constant dense<0.000000e+00> : vector<8xf32>
    %109 = vector.multi_reduction <add>, %108, %cst_49 [1] : vector<8x32xf32> to vector<8xf32>
    %110 = vector.shape_cast %109 : vector<8xf32> to vector<8x1xf32>
    %cst_50 = arith.constant 3.200000e+01 : f32
    %111 = vector.broadcast %cst_50 : f32 to vector<8x1xf32>
    %112 = arith.divf %110, %111 : vector<8x1xf32>
    %113 = vector.broadcast %112 : vector<8x1xf32> to vector<8x32xf32>
    %114 = arith.subf %108, %113 : vector<8x32xf32>
    %115 = arith.mulf %114, %114 : vector<8x32xf32>
    %cst_51 = arith.constant dense<0.000000e+00> : vector<8xf32>
    %116 = vector.multi_reduction <add>, %115, %cst_51 [1] : vector<8x32xf32> to vector<8xf32>
    %117 = vector.shape_cast %116 : vector<8xf32> to vector<8x1xf32>
    %cst_52 = arith.constant 3.200000e+01 : f32
    %118 = vector.broadcast %cst_52 : f32 to vector<8x1xf32>
    %119 = arith.divf %117, %118 : vector<8x1xf32>
    %120 = vector.broadcast %112 : vector<8x1xf32> to vector<8x32xf32>
    %121 = arith.subf %108, %120 : vector<8x32xf32>
    %cst_53 = arith.constant 9.99999974E-6 : f32
    %122 = vector.broadcast %cst_53 : f32 to vector<8x1xf32>
    %123 = arith.addf %119, %122 : vector<8x1xf32>
    %124 = math.rsqrt %123 : vector<8x1xf32>
    %125 = vector.broadcast %124 : vector<8x1xf32> to vector<8x32xf32>
    %126 = arith.mulf %121, %125 : vector<8x32xf32>
    %c0_54 = arith.constant 0 : index
    %c0_55 = arith.constant 0 : index
    %127 = vector.load %arg7[%c0_54, %c0_55] : memref<1x32xf32, #tpu.memory_space<vmem>>, vector<1x32xf32>
    %128 = vector.broadcast %127 : vector<1x32xf32> to vector<8x32xf32>
    %129 = arith.mulf %126, %128 : vector<8x32xf32>
    %c0_56 = arith.constant 0 : index
    %c0_57 = arith.constant 0 : index
    %130 = vector.load %arg8[%c0_56, %c0_57] : memref<1x32xf32, #tpu.memory_space<vmem>>, vector<1x32xf32>
    %131 = vector.broadcast %130 : vector<1x32xf32> to vector<8x32xf32>
    %132 = arith.addf %129, %131 : vector<8x32xf32>
    %c0_58 = arith.constant 0 : index
    %c0_59 = arith.constant 0 : index
    %133 = vector.load %arg9[%c0_58, %c0_59] : memref<32x32xf32, #tpu.memory_space<vmem>>, vector<32x32xf32>
    %cst_60 = arith.constant dense<0.000000e+00> : vector<8x32xf32>
    %134 = tpu.matmul %132, %133, %cst_60 {dimension_numbers = #tpu.dot_dimension_numbers<[1], [1], [0], [0], [0, 0, 1, 0], [], []>} : vector<8x32xf32>, vector<32x32xf32>, vector<8x32xf32> -> vector<8x32xf32>
    %c0_61 = arith.constant 0 : index
    %c0_62 = arith.constant 0 : index
    %135 = vector.load %arg10[%c0_61, %c0_62] : memref<64x32xf32, #tpu.memory_space<vmem>>, vector<64x32xf32>
    %cst_63 = arith.constant dense<0.000000e+00> : vector<16x64xf32>
    %136 = tpu.matmul %3, %135, %cst_63 {dimension_numbers = #tpu.dot_dimension_numbers<[1], [1], [0], [0], [0, 0, 1, 0], [], []>} : vector<16x32xf32>, vector<64x32xf32>, vector<16x64xf32> -> vector<16x64xf32>
    %137 = vector.extract_strided_slice %136 {offsets = [0, 0], sizes = [16, 32], strides = [1, 1]} : vector<16x64xf32> to vector<16x32xf32>
    %138 = vector.extract_strided_slice %136 {offsets = [0, 32], sizes = [16, 32], strides = [1, 1]} : vector<16x64xf32> to vector<16x32xf32>
    %c0_64 = arith.constant 0 : index
    %c0_65 = arith.constant 0 : index
    %c0_66 = arith.constant 0 : index
    %139 = vector.load %arg4[%c0_64, %c0_65, %c0_66] : memref<1x1x16xf32, #tpu.memory_space<vmem>>, vector<1x1x16xf32>
    %140 = vector.shape_cast %139 : vector<1x1x16xf32> to vector<1x16xf32>
    %c0_67 = arith.constant 0 : index
    %c0_68 = arith.constant 0 : index
    %141 = vector.load %arg11[%c0_67, %c0_68] : memref<32x32xf32, #tpu.memory_space<vmem>>, vector<32x32xf32>
    %cst_69 = arith.constant 0.000000e+00 : f32
    %142 = vector.broadcast %cst_69 : f32 to vector<8x32xf32>
    %143 = vector.extract_strided_slice %134 {offsets = [0, 0], sizes = [8, 8], strides = [1, 1]} : vector<8x32xf32> to vector<8x8xf32>
    %cst_70 = arith.constant 0.353553385 : f32
    %144 = vector.broadcast %cst_70 : f32 to vector<8x8xf32>
    %145 = arith.mulf %143, %144 : vector<8x8xf32>
    %146 = vector.extract_strided_slice %137 {offsets = [0, 0], sizes = [16, 8], strides = [1, 1]} : vector<16x32xf32> to vector<16x8xf32>
    %147 = vector.extract_strided_slice %138 {offsets = [0, 0], sizes = [16, 8], strides = [1, 1]} : vector<16x32xf32> to vector<16x8xf32>
    %cst_71 = arith.constant dense<0.000000e+00> : vector<8x16xf32>
    %148 = tpu.matmul %145, %146, %cst_71 {dimension_numbers = #tpu.dot_dimension_numbers<[1], [1], [0], [0], [0, 0, 1, 0], [], []>} : vector<8x8xf32>, vector<16x8xf32>, vector<8x16xf32> -> vector<8x16xf32>
    %149 = vector.broadcast %140 : vector<1x16xf32> to vector<8x16xf32>
    %150 = arith.addf %148, %149 : vector<8x16xf32>
    %cst_72 = arith.constant dense<0xFF800000> : vector<8xf32>
    %151 = vector.multi_reduction <maximumf>, %150, %cst_72 [1] : vector<8x16xf32> to vector<8xf32>
    %152 = vector.shape_cast %151 : vector<8xf32> to vector<8x1xf32>
    %153 = vector.broadcast %152 : vector<8x1xf32> to vector<8x16xf32>
    %154 = arith.subf %150, %153 : vector<8x16xf32>
    %155 = math.exp %154 : vector<8x16xf32>
    %cst_73 = arith.constant dense<0.000000e+00> : vector<8xf32>
    %156 = vector.multi_reduction <add>, %155, %cst_73 [1] : vector<8x16xf32> to vector<8xf32>
    %157 = vector.shape_cast %156 : vector<8xf32> to vector<8x1xf32>
    %158 = tpu.reciprocal %157 {approx = true} : vector<8x1xf32> -> vector<8x1xf32>
    %159 = vector.broadcast %158 : vector<8x1xf32> to vector<8x16xf32>
    %160 = arith.mulf %155, %159 : vector<8x16xf32>
    %c0_74 = arith.constant 0 : index
    %c0_75 = arith.constant 0 : index
    %c0_76 = arith.constant 0 : index
    %c0_77 = arith.constant 0 : index
    %161 = vector.load %arg20[%c0_74, %c0_75, %c0_76, %c0_77] : memref<1x4x8x16xf32, #tpu.memory_space<vmem>>, vector<1x1x8x16xf32>
    %162 = vector.shape_cast %161 : vector<1x1x8x16xf32> to vector<8x16xf32>
    %163 = vector.shape_cast %160 : vector<8x16xf32> to vector<1x1x8x16xf32>
    tpu.vector_store %arg20[%c0_74, %c0_75, %c0_76, %c0_77], %163 {strides = array<i32>} : memref<1x4x8x16xf32, #tpu.memory_space<vmem>>, vector<1x1x8x16xf32>,
    %cst_78 = arith.constant dense<0.000000e+00> : vector<8x8xf32>
    %164 = tpu.matmul %160, %147, %cst_78 {dimension_numbers = #tpu.dot_dimension_numbers<[1], [0], [0], [1], [0, 0, 1, 1], [], []>} : vector<8x16xf32>, vector<16x8xf32>, vector<8x8xf32> -> vector<8x8xf32>
    %165 = vector.extract_strided_slice %141 {offsets = [0, 0], sizes = [32, 8], strides = [1, 1]} : vector<32x32xf32> to vector<32x8xf32>
    %cst_79 = arith.constant dense<0.000000e+00> : vector<8x32xf32>
    %166 = tpu.matmul %164, %165, %cst_79 {dimension_numbers = #tpu.dot_dimension_numbers<[1], [1], [0], [0], [0, 0, 1, 0], [], []>} : vector<8x8xf32>, vector<32x8xf32>, vector<8x32xf32> -> vector<8x32xf32>
    %167 = arith.addf %142, %166 : vector<8x32xf32>
    %168 = vector.extract_strided_slice %134 {offsets = [0, 8], sizes = [8, 8], strides = [1, 1]} : vector<8x32xf32> to vector<8x8xf32>
    %cst_80 = arith.constant 0.353553385 : f32
    %169 = vector.broadcast %cst_80 : f32 to vector<8x8xf32>
    %170 = arith.mulf %168, %169 : vector<8x8xf32>
    %171 = vector.extract_strided_slice %137 {offsets = [0, 8], sizes = [16, 8], strides = [1, 1]} : vector<16x32xf32> to vector<16x8xf32>
    %172 = vector.extract_strided_slice %138 {offsets = [0, 8], sizes = [16, 8], strides = [1, 1]} : vector<16x32xf32> to vector<16x8xf32>
    %cst_81 = arith.constant dense<0.000000e+00> : vector<8x16xf32>
    %173 = tpu.matmul %170, %171, %cst_81 {dimension_numbers = #tpu.dot_dimension_numbers<[1], [1], [0], [0], [0, 0, 1, 0], [], []>} : vector<8x8xf32>, vector<16x8xf32>, vector<8x16xf32> -> vector<8x16xf32>
    %174 = vector.broadcast %140 : vector<1x16xf32> to vector<8x16xf32>
    %175 = arith.addf %173, %174 : vector<8x16xf32>
    %cst_82 = arith.constant dense<0xFF800000> : vector<8xf32>
    %176 = vector.multi_reduction <maximumf>, %175, %cst_82 [1] : vector<8x16xf32> to vector<8xf32>
    %177 = vector.shape_cast %176 : vector<8xf32> to vector<8x1xf32>
    %178 = vector.broadcast %177 : vector<8x1xf32> to vector<8x16xf32>
    %179 = arith.subf %175, %178 : vector<8x16xf32>
    %180 = math.exp %179 : vector<8x16xf32>
    %cst_83 = arith.constant dense<0.000000e+00> : vector<8xf32>
    %181 = vector.multi_reduction <add>, %180, %cst_83 [1] : vector<8x16xf32> to vector<8xf32>
    %182 = vector.shape_cast %181 : vector<8xf32> to vector<8x1xf32>
    %183 = tpu.reciprocal %182 {approx = true} : vector<8x1xf32> -> vector<8x1xf32>
    %184 = vector.broadcast %183 : vector<8x1xf32> to vector<8x16xf32>
    %185 = arith.mulf %180, %184 : vector<8x16xf32>
    %c0_84 = arith.constant 0 : index
    %c1_85 = arith.constant 1 : index
    %c0_86 = arith.constant 0 : index
    %c0_87 = arith.constant 0 : index
    %186 = vector.load %arg20[%c0_84, %c1_85, %c0_86, %c0_87] : memref<1x4x8x16xf32, #tpu.memory_space<vmem>>, vector<1x1x8x16xf32>
    %187 = vector.shape_cast %186 : vector<1x1x8x16xf32> to vector<8x16xf32>
    %188 = vector.shape_cast %185 : vector<8x16xf32> to vector<1x1x8x16xf32>
    tpu.vector_store %arg20[%c0_84, %c1_85, %c0_86, %c0_87], %188 {strides = array<i32>} : memref<1x4x8x16xf32, #tpu.memory_space<vmem>>, vector<1x1x8x16xf32>,
    %cst_88 = arith.constant dense<0.000000e+00> : vector<8x8xf32>
    %189 = tpu.matmul %185, %172, %cst_88 {dimension_numbers = #tpu.dot_dimension_numbers<[1], [0], [0], [1], [0, 0, 1, 1], [], []>} : vector<8x16xf32>, vector<16x8xf32>, vector<8x8xf32> -> vector<8x8xf32>
    %190 = vector.extract_strided_slice %141 {offsets = [0, 8], sizes = [32, 8], strides = [1, 1]} : vector<32x32xf32> to vector<32x8xf32>
    %cst_89 = arith.constant dense<0.000000e+00> : vector<8x32xf32>
    %191 = tpu.matmul %189, %190, %cst_89 {dimension_numbers = #tpu.dot_dimension_numbers<[1], [1], [0], [0], [0, 0, 1, 0], [], []>} : vector<8x8xf32>, vector<32x8xf32>, vector<8x32xf32> -> vector<8x32xf32>
    %192 = arith.addf %167, %191 : vector<8x32xf32>
    %193 = vector.extract_strided_slice %134 {offsets = [0, 16], sizes = [8, 8], strides = [1, 1]} : vector<8x32xf32> to vector<8x8xf32>
    %cst_90 = arith.constant 0.353553385 : f32
    %194 = vector.broadcast %cst_90 : f32 to vector<8x8xf32>
    %195 = arith.mulf %193, %194 : vector<8x8xf32>
    %196 = vector.extract_strided_slice %137 {offsets = [0, 16], sizes = [16, 8], strides = [1, 1]} : vector<16x32xf32> to vector<16x8xf32>
    %197 = vector.extract_strided_slice %138 {offsets = [0, 16], sizes = [16, 8], strides = [1, 1]} : vector<16x32xf32> to vector<16x8xf32>
    %cst_91 = arith.constant dense<0.000000e+00> : vector<8x16xf32>
    %198 = tpu.matmul %195, %196, %cst_91 {dimension_numbers = #tpu.dot_dimension_numbers<[1], [1], [0], [0], [0, 0, 1, 0], [], []>} : vector<8x8xf32>, vector<16x8xf32>, vector<8x16xf32> -> vector<8x16xf32>
    %199 = vector.broadcast %140 : vector<1x16xf32> to vector<8x16xf32>
    %200 = arith.addf %198, %199 : vector<8x16xf32>
    %cst_92 = arith.constant dense<0xFF800000> : vector<8xf32>
    %201 = vector.multi_reduction <maximumf>, %200, %cst_92 [1] : vector<8x16xf32> to vector<8xf32>
    %202 = vector.shape_cast %201 : vector<8xf32> to vector<8x1xf32>
    %203 = vector.broadcast %202 : vector<8x1xf32> to vector<8x16xf32>
    %204 = arith.subf %200, %203 : vector<8x16xf32>
    %205 = math.exp %204 : vector<8x16xf32>
    %cst_93 = arith.constant dense<0.000000e+00> : vector<8xf32>
    %206 = vector.multi_reduction <add>, %205, %cst_93 [1] : vector<8x16xf32> to vector<8xf32>
    %207 = vector.shape_cast %206 : vector<8xf32> to vector<8x1xf32>
    %208 = tpu.reciprocal %207 {approx = true} : vector<8x1xf32> -> vector<8x1xf32>
    %209 = vector.broadcast %208 : vector<8x1xf32> to vector<8x16xf32>
    %210 = arith.mulf %205, %209 : vector<8x16xf32>
    %c0_94 = arith.constant 0 : index
    %c2_95 = arith.constant 2 : index
    %c0_96 = arith.constant 0 : index
    %c0_97 = arith.constant 0 : index
    %211 = vector.load %arg20[%c0_94, %c2_95, %c0_96, %c0_97] : memref<1x4x8x16xf32, #tpu.memory_space<vmem>>, vector<1x1x8x16xf32>
    %212 = vector.shape_cast %211 : vector<1x1x8x16xf32> to vector<8x16xf32>
    %213 = vector.shape_cast %210 : vector<8x16xf32> to vector<1x1x8x16xf32>
    tpu.vector_store %arg20[%c0_94, %c2_95, %c0_96, %c0_97], %213 {strides = array<i32>} : memref<1x4x8x16xf32, #tpu.memory_space<vmem>>, vector<1x1x8x16xf32>,
    %cst_98 = arith.constant dense<0.000000e+00> : vector<8x8xf32>
    %214 = tpu.matmul %210, %197, %cst_98 {dimension_numbers = #tpu.dot_dimension_numbers<[1], [0], [0], [1], [0, 0, 1, 1], [], []>} : vector<8x16xf32>, vector<16x8xf32>, vector<8x8xf32> -> vector<8x8xf32>
    %215 = vector.extract_strided_slice %141 {offsets = [0, 16], sizes = [32, 8], strides = [1, 1]} : vector<32x32xf32> to vector<32x8xf32>
    %cst_99 = arith.constant dense<0.000000e+00> : vector<8x32xf32>
    %216 = tpu.matmul %214, %215, %cst_99 {dimension_numbers = #tpu.dot_dimension_numbers<[1], [1], [0], [0], [0, 0, 1, 0], [], []>} : vector<8x8xf32>, vector<32x8xf32>, vector<8x32xf32> -> vector<8x32xf32>
    %217 = arith.addf %192, %216 : vector<8x32xf32>
    %218 = vector.extract_strided_slice %134 {offsets = [0, 24], sizes = [8, 8], strides = [1, 1]} : vector<8x32xf32> to vector<8x8xf32>
    %cst_100 = arith.constant 0.353553385 : f32
    %219 = vector.broadcast %cst_100 : f32 to vector<8x8xf32>
    %220 = arith.mulf %218, %219 : vector<8x8xf32>
    %221 = vector.extract_strided_slice %137 {offsets = [0, 24], sizes = [16, 8], strides = [1, 1]} : vector<16x32xf32> to vector<16x8xf32>
    %222 = vector.extract_strided_slice %138 {offsets = [0, 24], sizes = [16, 8], strides = [1, 1]} : vector<16x32xf32> to vector<16x8xf32>
    %cst_101 = arith.constant dense<0.000000e+00> : vector<8x16xf32>
    %223 = tpu.matmul %220, %221, %cst_101 {dimension_numbers = #tpu.dot_dimension_numbers<[1], [1], [0], [0], [0, 0, 1, 0], [], []>} : vector<8x8xf32>, vector<16x8xf32>, vector<8x16xf32> -> vector<8x16xf32>
    %224 = vector.broadcast %140 : vector<1x16xf32> to vector<8x16xf32>
    %225 = arith.addf %223, %224 : vector<8x16xf32>
    %cst_102 = arith.constant dense<0xFF800000> : vector<8xf32>
    %226 = vector.multi_reduction <maximumf>, %225, %cst_102 [1] : vector<8x16xf32> to vector<8xf32>
    %227 = vector.shape_cast %226 : vector<8xf32> to vector<8x1xf32>
    %228 = vector.broadcast %227 : vector<8x1xf32> to vector<8x16xf32>
    %229 = arith.subf %225, %228 : vector<8x16xf32>
    %230 = math.exp %229 : vector<8x16xf32>
    %cst_103 = arith.constant dense<0.000000e+00> : vector<8xf32>
    %231 = vector.multi_reduction <add>, %230, %cst_103 [1] : vector<8x16xf32> to vector<8xf32>
    %232 = vector.shape_cast %231 : vector<8xf32> to vector<8x1xf32>
    %233 = tpu.reciprocal %232 {approx = true} : vector<8x1xf32> -> vector<8x1xf32>
    %234 = vector.broadcast %233 : vector<8x1xf32> to vector<8x16xf32>
    %235 = arith.mulf %230, %234 : vector<8x16xf32>
    %c0_104 = arith.constant 0 : index
    %c3_105 = arith.constant 3 : index
    %c0_106 = arith.constant 0 : index
    %c0_107 = arith.constant 0 : index
    %236 = vector.load %arg20[%c0_104, %c3_105, %c0_106, %c0_107] : memref<1x4x8x16xf32, #tpu.memory_space<vmem>>, vector<1x1x8x16xf32>
    %237 = vector.shape_cast %236 : vector<1x1x8x16xf32> to vector<8x16xf32>
    %238 = vector.shape_cast %235 : vector<8x16xf32> to vector<1x1x8x16xf32>
    tpu.vector_store %arg20[%c0_104, %c3_105, %c0_106, %c0_107], %238 {strides = array<i32>} : memref<1x4x8x16xf32, #tpu.memory_space<vmem>>, vector<1x1x8x16xf32>,
    %cst_108 = arith.constant dense<0.000000e+00> : vector<8x8xf32>
    %239 = tpu.matmul %235, %222, %cst_108 {dimension_numbers = #tpu.dot_dimension_numbers<[1], [0], [0], [1], [0, 0, 1, 1], [], []>} : vector<8x16xf32>, vector<16x8xf32>, vector<8x8xf32> -> vector<8x8xf32>
    %240 = vector.extract_strided_slice %141 {offsets = [0, 24], sizes = [32, 8], strides = [1, 1]} : vector<32x32xf32> to vector<32x8xf32>
    %cst_109 = arith.constant dense<0.000000e+00> : vector<8x32xf32>
    %241 = tpu.matmul %239, %240, %cst_109 {dimension_numbers = #tpu.dot_dimension_numbers<[1], [1], [0], [0], [0, 0, 1, 0], [], []>} : vector<8x8xf32>, vector<32x8xf32>, vector<8x32xf32> -> vector<8x32xf32>
    %242 = arith.addf %217, %241 : vector<8x32xf32>
    %243 = arith.addf %132, %242 : vector<8x32xf32>
    %cst_110 = arith.constant dense<0.000000e+00> : vector<8xf32>
    %244 = vector.multi_reduction <add>, %243, %cst_110 [1] : vector<8x32xf32> to vector<8xf32>
    %245 = vector.shape_cast %244 : vector<8xf32> to vector<8x1xf32>
    %cst_111 = arith.constant 3.200000e+01 : f32
    %246 = vector.broadcast %cst_111 : f32 to vector<8x1xf32>
    %247 = arith.divf %245, %246 : vector<8x1xf32>
    %248 = vector.broadcast %247 : vector<8x1xf32> to vector<8x32xf32>
    %249 = arith.subf %243, %248 : vector<8x32xf32>
    %250 = arith.mulf %249, %249 : vector<8x32xf32>
    %cst_112 = arith.constant dense<0.000000e+00> : vector<8xf32>
    %251 = vector.multi_reduction <add>, %250, %cst_112 [1] : vector<8x32xf32> to vector<8xf32>
    %252 = vector.shape_cast %251 : vector<8xf32> to vector<8x1xf32>
    %cst_113 = arith.constant 3.200000e+01 : f32
    %253 = vector.broadcast %cst_113 : f32 to vector<8x1xf32>
    %254 = arith.divf %252, %253 : vector<8x1xf32>
    %255 = vector.broadcast %247 : vector<8x1xf32> to vector<8x32xf32>
    %256 = arith.subf %243, %255 : vector<8x32xf32>
    %cst_114 = arith.constant 9.99999974E-6 : f32
    %257 = vector.broadcast %cst_114 : f32 to vector<8x1xf32>
    %258 = arith.addf %254, %257 : vector<8x1xf32>
    %259 = math.rsqrt %258 : vector<8x1xf32>
    %260 = vector.broadcast %259 : vector<8x1xf32> to vector<8x32xf32>
    %261 = arith.mulf %256, %260 : vector<8x32xf32>
    %c0_115 = arith.constant 0 : index
    %c0_116 = arith.constant 0 : index
    %262 = vector.load %arg12[%c0_115, %c0_116] : memref<1x32xf32, #tpu.memory_space<vmem>>, vector<1x32xf32>
    %263 = vector.broadcast %262 : vector<1x32xf32> to vector<8x32xf32>
    %264 = arith.mulf %261, %263 : vector<8x32xf32>
    %c0_117 = arith.constant 0 : index
    %c0_118 = arith.constant 0 : index
    %265 = vector.load %arg13[%c0_117, %c0_118] : memref<1x32xf32, #tpu.memory_space<vmem>>, vector<1x32xf32>
    %266 = vector.broadcast %265 : vector<1x32xf32> to vector<8x32xf32>
    %267 = arith.addf %264, %266 : vector<8x32xf32>
    %c0_119 = arith.constant 0 : index
    %c0_120 = arith.constant 0 : index
    %268 = vector.load %arg14[%c0_119, %c0_120] : memref<32x32xf32, #tpu.memory_space<vmem>>, vector<32x32xf32>
    %cst_121 = arith.constant dense<0.000000e+00> : vector<8x32xf32>
    %269 = tpu.matmul %267, %268, %cst_121 {dimension_numbers = #tpu.dot_dimension_numbers<[1], [1], [0], [0], [0, 0, 1, 0], [], []>} : vector<8x32xf32>, vector<32x32xf32>, vector<8x32xf32> -> vector<8x32xf32>
    %c0_122 = arith.constant 0 : index
    %c0_123 = arith.constant 0 : index
    %270 = vector.load %arg15[%c0_122, %c0_123] : memref<1x32xf32, #tpu.memory_space<vmem>>, vector<1x32xf32>
    %271 = vector.broadcast %270 : vector<1x32xf32> to vector<8x32xf32>
    %272 = arith.addf %269, %271 : vector<8x32xf32>
    %cst_124 = arith.constant 0.000000e+00 : f32
    %273 = vector.broadcast %cst_124 : f32 to vector<8x32xf32>
    %274 = arith.maximumf %272, %273 : vector<8x32xf32>
    %c0_125 = arith.constant 0 : index
    %c0_126 = arith.constant 0 : index
    %275 = vector.load %arg16[%c0_125, %c0_126] : memref<32x32xf32, #tpu.memory_space<vmem>>, vector<32x32xf32>
    %cst_127 = arith.constant dense<0.000000e+00> : vector<8x32xf32>
    %276 = tpu.matmul %274, %275, %cst_127 {dimension_numbers = #tpu.dot_dimension_numbers<[1], [1], [0], [0], [0, 0, 1, 0], [], []>} : vector<8x32xf32>, vector<32x32xf32>, vector<8x32xf32> -> vector<8x32xf32>
    %c0_128 = arith.constant 0 : index
    %c0_129 = arith.constant 0 : index
    %277 = vector.load %arg17[%c0_128, %c0_129] : memref<1x32xf32, #tpu.memory_space<vmem>>, vector<1x32xf32>
    %278 = vector.broadcast %277 : vector<1x32xf32> to vector<8x32xf32>
    %279 = arith.addf %276, %278 : vector<8x32xf32>
    %280 = arith.addf %279, %267 : vector<8x32xf32>
    %cst_130 = arith.constant dense<0.000000e+00> : vector<8xf32>
    %281 = vector.multi_reduction <add>, %280, %cst_130 [1] : vector<8x32xf32> to vector<8xf32>
    %282 = vector.shape_cast %281 : vector<8xf32> to vector<8x1xf32>
    %cst_131 = arith.constant 3.200000e+01 : f32
    %283 = vector.broadcast %cst_131 : f32 to vector<8x1xf32>
    %284 = arith.divf %282, %283 : vector<8x1xf32>
    %285 = vector.broadcast %284 : vector<8x1xf32> to vector<8x32xf32>
    %286 = arith.subf %280, %285 : vector<8x32xf32>
    %287 = arith.mulf %286, %286 : vector<8x32xf32>
    %cst_132 = arith.constant dense<0.000000e+00> : vector<8xf32>
    %288 = vector.multi_reduction <add>, %287, %cst_132 [1] : vector<8x32xf32> to vector<8xf32>
    %289 = vector.shape_cast %288 : vector<8xf32> to vector<8x1xf32>
    %cst_133 = arith.constant 3.200000e+01 : f32
    %290 = vector.broadcast %cst_133 : f32 to vector<8x1xf32>
    %291 = arith.divf %289, %290 : vector<8x1xf32>
    %292 = vector.broadcast %284 : vector<8x1xf32> to vector<8x32xf32>
    %293 = arith.subf %280, %292 : vector<8x32xf32>
    %cst_134 = arith.constant 9.99999974E-6 : f32
    %294 = vector.broadcast %cst_134 : f32 to vector<8x1xf32>
    %295 = arith.addf %291, %294 : vector<8x1xf32>
    %296 = math.rsqrt %295 : vector<8x1xf32>
    %297 = vector.broadcast %296 : vector<8x1xf32> to vector<8x32xf32>
    %298 = arith.mulf %293, %297 : vector<8x32xf32>
    %c0_135 = arith.constant 0 : index
    %c0_136 = arith.constant 0 : index
    %299 = vector.load %arg12[%c0_135, %c0_136] : memref<1x32xf32, #tpu.memory_space<vmem>>, vector<1x32xf32>
    %300 = vector.broadcast %299 : vector<1x32xf32> to vector<8x32xf32>
    %301 = arith.mulf %298, %300 : vector<8x32xf32>
    %c0_137 = arith.constant 0 : index
    %c0_138 = arith.constant 0 : index
    %302 = vector.load %arg13[%c0_137, %c0_138] : memref<1x32xf32, #tpu.memory_space<vmem>>, vector<1x32xf32>
    %303 = vector.broadcast %302 : vector<1x32xf32> to vector<8x32xf32>
    %304 = arith.addf %301, %303 : vector<8x32xf32>
    %c0_139 = arith.constant 0 : index
    %c0_140 = arith.constant 0 : index
    %c0_141 = arith.constant 0 : index
    %305 = vector.load %arg18[%c0_139, %c0_140, %c0_141] : memref<1x8x32xf32, #tpu.memory_space<vmem>>, vector<1x8x32xf32>
    %306 = vector.shape_cast %305 : vector<1x8x32xf32> to vector<8x32xf32>
    %307 = vector.shape_cast %304 : vector<8x32xf32> to vector<1x8x32xf32>
    tpu.vector_store %arg18[%c0_139, %c0_140, %c0_141], %307 {strides = array<i32>} : memref<1x8x32xf32, #tpu.memory_space<vmem>>, vector<1x8x32xf32>,
    return
  }
  func.func @transform_0(%arg0: i32) -> (i32, i32, i32) {
    %c0_i32 = arith.constant 0 : i32
    %c0_i32_0 = arith.constant 0 : i32
    %c0_i32_1 = arith.constant 0 : i32
    return %arg0, %c0_i32, %c0_i32_0 : i32, i32, i32
  }
  func.func @transform_1(%arg0: i32) -> (i32, i32, i32) {
    %c0_i32 = arith.constant 0 : i32
    %c0_i32_0 = arith.constant 0 : i32
    %c0_i32_1 = arith.constant 0 : i32
    return %arg0, %c0_i32, %c0_i32_0 : i32, i32, i32
  }
  func.func @transform_2(%arg0: i32) -> (i32, i32) {
    %c0_i32 = arith.constant 0 : i32
    %c0_i32_0 = arith.constant 0 : i32
    %c0_i32_1 = arith.constant 0 : i32
    return %c0_i32, %c0_i32_0 : i32, i32
  }
  func.func @transform_3(%arg0: i32) -> (i32, i32, i32) {
    %c0_i32 = arith.constant 0 : i32
    %c0_i32_0 = arith.constant 0 : i32
    %c0_i32_1 = arith.constant 0 : i32
    return %arg0, %c0_i32, %c0_i32_0 : i32, i32, i32
  }
  func.func @transform_4(%arg0: i32) -> (i32, i32) {
    %c0_i32 = arith.constant 0 : i32
    %c0_i32_0 = arith.constant 0 : i32
    %c0_i32_1 = arith.constant 0 : i32
    return %c0_i32, %c0_i32_0 : i32, i32
  }
  func.func @transform_5(%arg0: i32) -> (i32, i32) {
    %c0_i32 = arith.constant 0 : i32
    %c0_i32_0 = arith.constant 0 : i32
    %c0_i32_1 = arith.constant 0 : i32
    return %c0_i32, %c0_i32_0 : i32, i32
  }
  func.func @transform_6(%arg0: i32) -> (i32, i32) {
    %c0_i32 = arith.constant 0 : i32
    %c0_i32_0 = arith.constant 0 : i32
    %c0_i32_1 = arith.constant 0 : i32
    return %c0_i32, %c0_i32_0 : i32, i32
  }
  func.func @transform_7(%arg0: i32) -> (i32, i32) {
    %c0_i32 = arith.constant 0 : i32
    %c0_i32_0 = arith.constant 0 : i32
    %c0_i32_1 = arith.constant 0 : i32
    return %c0_i32, %c0_i32_0 : i32, i32
  }
  func.func @transform_8(%arg0: i32) -> (i32, i32) {
    %c0_i32 = arith.constant 0 : i32
    %c0_i32_0 = arith.constant 0 : i32
    %c0_i32_1 = arith.constant 0 : i32
    return %c0_i32, %c0_i32_0 : i32, i32
  }
  func.func @transform_9(%arg0: i32) -> (i32, i32) {
    %c0_i32 = arith.constant 0 : i32
    %c0_i32_0 = arith.constant 0 : i32
    %c0_i32_1 = arith.constant 0 : i32
    return %c0_i32, %c0_i32_0 : i32, i32
  }
  func.func @transform_10(%arg0: i32) -> (i32, i32) {
    %c0_i32 = arith.constant 0 : i32
    %c0_i32_0 = arith.constant 0 : i32
    %c0_i32_1 = arith.constant 0 : i32
    return %c0_i32, %c0_i32_0 : i32, i32
  }
  func.func @transform_11(%arg0: i32) -> (i32, i32) {
    %c0_i32 = arith.constant 0 : i32
    %c0_i32_0 = arith.constant 0 : i32
    %c0_i32_1 = arith.constant 0 : i32
    return %c0_i32, %c0_i32_0 : i32, i32
  }
  func.func @transform_12(%arg0: i32) -> (i32, i32) {
    %c0_i32 = arith.constant 0 : i32
    %c0_i32_0 = arith.constant 0 : i32
    %c0_i32_1 = arith.constant 0 : i32
    return %c0_i32, %c0_i32_0 : i32, i32
  }
  func.func @transform_13(%arg0: i32) -> (i32, i32) {
    %c0_i32 = arith.constant 0 : i32
    %c0_i32_0 = arith.constant 0 : i32
    %c0_i32_1 = arith.constant 0 : i32
    return %c0_i32, %c0_i32_0 : i32, i32
  }
  func.func @transform_14(%arg0: i32) -> (i32, i32) {
    %c0_i32 = arith.constant 0 : i32
    %c0_i32_0 = arith.constant 0 : i32
    %c0_i32_1 = arith.constant 0 : i32
    return %c0_i32, %c0_i32_0 : i32, i32
  }
  func.func @transform_15(%arg0: i32) -> (i32, i32) {
    %c0_i32 = arith.constant 0 : i32
    %c0_i32_0 = arith.constant 0 : i32
    %c0_i32_1 = arith.constant 0 : i32
    return %c0_i32, %c0_i32_0 : i32, i32
  }
  func.func @transform_16(%arg0: i32) -> (i32, i32) {
    %c0_i32 = arith.constant 0 : i32
    %c0_i32_0 = arith.constant 0 : i32
    %c0_i32_1 = arith.constant 0 : i32
    return %c0_i32, %c0_i32_0 : i32, i32
  }
  func.func @transform_17(%arg0: i32) -> (i32, i32, i32) {
    %c0_i32 = arith.constant 0 : i32
    %c0_i32_0 = arith.constant 0 : i32
    %c0_i32_1 = arith.constant 0 : i32
    return %arg0, %c0_i32, %c0_i32_0 : i32, i32, i32
  }
  func.func @transform_18(%arg0: i32) -> (i32, i32, i32, i32) {
    %c0_i32 = arith.constant 0 : i32
    %c0_i32_0 = arith.constant 0 : i32
    %c0_i32_1 = arith.constant 0 : i32
    %c0_i32_2 = arith.constant 0 : i32
    return %arg0, %c0_i32, %c0_i32_0, %c0_i32_1 : i32, i32, i32, i32
  }
  func.func @transform_19(%arg0: i32) -> (i32, i32, i32, i32) {
    %c0_i32 = arith.constant 0 : i32
    %c0_i32_0 = arith.constant 0 : i32
    %c0_i32_1 = arith.constant 0 : i32
    %c0_i32_2 = arith.constant 0 : i32
    return %arg0, %c0_i32, %c0_i32_0, %c0_i32_1 : i32, i32, i32, i32
  }
}

</mosaic_0001>

<bundles_post_ra>
// kernel: decoder_layer.1
= control target key start
LH: loop header
LB: loop body
LE: loop exit
PB: predicated region body
PF: predicated region fallthrough
CT: control target
= control target key end

     0   :  { %s3136_s0 = inlined_call_operand.vmem [shape: f32[2,8,32], index: 0, kind: input, shape index: {}]   ;;  %s3137_s1 = inlined_call_operand.vmem [shape: f32[2,16,32], index: 1, kind: input, shape index: {}]   ;;  %s3138_s2 = inlined_call_operand.vmem [shape: f32[8,8], index: 2, kind: input, shape index: {}]   ;;  %s3139_s3 = inlined_call_operand.vmem [shape: f32[2,1,16], index: 3, kind: input, shape index: {}]   ;;  %s3140_s4 = inlined_call_operand.vmem [shape: f32[96,32], index: 4, kind: input, shape index: {}]   ;;  %s3141_s5 = inlined_call_operand.vmem [shape: f32[32,32], index: 5, kind: input, shape index: {}]   ;;  %s3142_s6 = inlined_call_operand.vmem [shape: f32[1,32], index: 6, kind: input, shape index: {}]   ;;  %s3143_s7 = inlined_call_operand.vmem [shape: f32[1,32], index: 7, kind: input, shape index: {}]   ;;  %s3144_s8 = inlined_call_operand.vmem [shape: f32[32,32], index: 8, kind: input, shape index: {}]   ;;  %s3145_s9 = inlined_call_operand.vmem [shape: f32[64,32], index: 9, kind: input, shape index: {}]   ;;  %s3146_s10 = inlined_call_operand.vmem [shape: f32[32,32], index: 10, kind: input, shape index: {}]   ;;  %s3147_s11 = inlined_call_operand.vmem [shape: f32[1,32], index: 11, kind: input, shape index: {}]   ;;  %s3148_s12 = inlined_call_operand.vmem [shape: f32[1,32], index: 12, kind: input, shape index: {}]   ;;  %s3149_s13 = inlined_call_operand.vmem [shape: f32[32,32], index: 13, kind: input, shape index: {}]   ;;  %s3150_s14 = inlined_call_operand.vmem [shape: f32[1,32], index: 14, kind: input, shape index: {}]   ;;  %s3151_s15 = inlined_call_operand.vmem [shape: f32[32,32], index: 15, kind: input, shape index: {}]   ;;  %s3152_s16 = inlined_call_operand.vmem [shape: f32[1,32], index: 16, kind: input, shape index: {}]   ;;  %s3153_s17 = inlined_call_operand.vmem [shape: f32[2,8,32], index: 17, kind: output, shape index: {0}]   ;;  %s3154_s18 = inlined_call_operand.hbm [shape: f32[2,4,8,8], index: 18, kind: output, shape index: {1}]   ;;  %s3155_s19 = inlined_call_operand.hbm [shape: f32[2,4,8,16], index: 19, kind: output, shape index: {2}]  }
   0x1   :  { %3172 = sst [smem:[#allocation12_spill]] %s3136_s0 }
   0x2   :  { %3173 = sst [smem:[#allocation13_spill]] %s3137_s1 }
   0x3   :  { %3174 = sst [smem:[#allocation14_spill]] %s3138_s2 }
   0x4   :  { %3175 = sst [smem:[#allocation15_spill]] %s3139_s3 }
   0x5   :  { %3176 = sst [smem:[#allocation16_spill]] %s3140_s4 }
   0x6   :  { %3177 = sst [smem:[#allocation17_spill]] %s3141_s5 }
   0x7   :  { %3178 = sst [smem:[#allocation18_spill]] %s3142_s6 }
   0x8   :  { %3179 = sst [smem:[#allocation19_spill]] %s3143_s7 }
   0x9   :  { %3180 = sst [smem:[#allocation20_spill]] %s3144_s8 }
   0xa   :  { %3181 = sst [smem:[#allocation21_spill]] %s3145_s9 }
   0xb   :  { %3182 = sst [smem:[#allocation22_spill]] %s3146_s10 }
   0xc   :  { %3183 = sst [smem:[#allocation23_spill]] %s3147_s11 }
   0xd   :  { %25 = vsyncpa [#allocation3], 0 }
   0xe   :  { %27 = vsyncpa [#allocation3 + $0x1], 0 }
   0xf   :  { %28 = vsyncpa [#allocation5], 0 }
  0x10   :  { %30 = vsyncpa [#allocation5 + $0x1], 0  ;;  %s2551_s0 = smov 0   ;;  %s2553_s30 = smov 0  }
  0x11   :  { %s2555_s20 = smov 0   ;;  %s2557_s21 = smov 0  }
  0x12 LB: > { %3184 = sst [smem:[#allocation8_spill]] %s2431_s20  ;;  %s2572_s1 = sadd.s32 4294967295, %s2435_s21   ;;  %s2435_s21 = sphi %s2557_s21, %s3212_s21   ;;  %s2431_s20 = sphi %s2555_s20, %s3214_s20   ;;  %s2427_s30 = sphi %s2553_s30, %s3216_s30   ;;  %s2423_s0 = sphi %s2551_s0, %s3215_s0  }
  0x13   : > { %s2083_s22 = sadd.s32 4294967294, %s2435_s21   ;;  %s2576_s2 = sadd.s32 1, %s2435_s21  }
  0x14   : > { %3185 = sst [smem:[#allocation9_spill]] %s2576_s2  ;;  %s441_s23 = sadd.s32 1, %s2431_s20 }
  0x15   : > { %s438_s24 = ssub.s32 %s2435_s21, %s2576_s2  ;;  %p451_p0 = scmp.ne.s32.totalorder %s2431_s20, %s2427_s30 }
  0x16   : > { %p439_p1 = scmp.eq.s32.totalorder %s438_s24, 0  ;;  %p452_p2 = scmp.eq.s32.totalorder %s2572_s1, 1 }
  0x17   : > { %p457_p3 = scmp.ne.s32.totalorder %s2427_s30, %s2423_s0  ;;  %p458_p4 = scmp.eq.s32.totalorder %s2083_s22, 1 }
  0x18   : > { %s2587_s25 = scalar_select %p439_p1, %s2431_s20, %s441_s23  }
  0x19   : > { %p2589_p5 = por %p452_p2, %p451_p0  ;;  %p2593_p6 = por %p458_p4, %p457_p3 }
  0x1a   : > { %3186 = sst [smem:[#allocation10_spill]] %s2587_s25  ;;  %p2086_p7 = scmp.ge.s32.totalorder %s2435_s21, 1 }
  0x1b   : > { %s3188_s26 = scalar_select %p2593_p6, 1, 0 }
  0x1c   : > { %p565_p8 = scmp.lt.s32.totalorder %s2435_s21, 3 }
  0x1d   : > { %3189 = sst [smem:[#allocation11_spill]] %s3188_s26 }
  0x1e   : > { %p566_p9 = pnand %p2086_p7, %p565_p8 }
  0x1f   : > { %s3190_s4 = sld [smem:[#allocation16_spill]] (!%p566_p9)  ;;  %p637_p10 = scmp.lt.s32.totalorder (!%p566_p9), %s2572_s1, 1 }
  0x20   : > { %569 = sbr.rel (%p566_p9) target bundleno = 4049 (0xfd1), region = 88  ;;  %s3191_s2 = sld [smem:[#allocation12_spill]] (!%p566_p9) }
  0x21   : > { %s3161_s24 = smov (!%p566_p9), 96   ;;  %s3170_s25 = smov (!%p566_p9), 120  }
  0x22   : > { %s3169_s20 = smov (!%p566_p9), 88   ;;  %s3192_s28 = sld [smem:[#allocation14_spill]] (!%p566_p9) }
  0x23   : > { %s2440_s29 = smov (!%p566_p9), 56   ;;  %s3163_s22 = smov (!%p566_p9), 72  }
  0x24   : > { %s3193_s5 = sld [smem:[#allocation17_spill]] (!%p566_p9) }
  0x25   : > { %v667_v0 = vld [vmem:[%s3190_s4 + $0x58] sm:$0xff]  ;;  %vm668_vm0 = vcmask 261120   ;;  %v666_v1 = vld [vmem:[%s3190_s4 + $0x50] sm:$0xff]  ;;  %v665_v2 = vld [vmem:[%s3190_s4 + $0x48] sm:$0xff]  ;;  %s2640_s23 = scalar_select %p637_p10, %s2572_s1, 1  ;;  %vm737_vm1 = vcmask 64512  }
  0x26   : > { %2093 = vmatpush.xpose.msk.msra.mxu0 %vm668_vm0, %v667_v0  ;;  %v664_v3 = vld [vmem:[%s3190_s4 + $0x40] sm:$0xff]  ;;  %v663_v4 = vld [vmem:[%s3190_s4 + $0x38] sm:$0xff]  ;;  %v662_v5 = vld [vmem:[%s3190_s4 + $0x30] sm:$0xff]  ;;  %s3194_s9 = sld [smem:[#allocation21_spill]]  ;;  %vm1334_vm6 = vcmask 130048  }
  0x27   : > { %v661_v6 = vld [vmem:[%s3190_s4 + $0x28] sm:$0xff]  ;;  %v660_v7 = vld [vmem:[%s3190_s4 + $0x20] sm:$0xff]  ;;  %v659_v8 = vld [vmem:[%s3190_s4 + $0x18] sm:$0xff]  ;;  %s3160_s27 = sshll.u32 %s2640_s23, 3  ;;  %s3196_s8 = sld [smem:[#allocation20_spill]] }
  0x28   : > { %v658_v9 = vld [vmem:[%s3190_s4 + $0x10] sm:$0xff]  ;;  %v657_v10 = vld [vmem:[%s3190_s4 + $0x8] sm:$0xff]  ;;  %v656_v11 = vld [vmem:[%s3190_s4] sm:$0xff]  ;;  %s640_s26 = scalar_lea.vmem %s3191_s2, %s3160_s27  ;;  %s3162_s2 = smov 80  }
  0x29   : > { %v2657_v12 = vld [vmem:[%s640_s26] sm:$0xff]  ;;  %s3165_s26 = smov 104   ;;  %s3195_s4 = sld [smem:[#allocation13_spill]] }
  0x2a   : > { %2094 = vmatpush.xpose.msk.msra.mxu0 %vm668_vm0, %v666_v1  ;;  %v2676_v18 = vld [vmem:[%s3192_s28] sm:$0xff]  ;;  %v2691_v25 = vld [vmem:[%s3193_s5 + $0x18] sm:$0xff]  ;;  %v2698_v26 = vld [vmem:[%s3193_s5 + $0x10] sm:$0xff]  ;;  %s2446_s28 = smov 48   ;;  %s3198_s6 = sld [smem:[#allocation18_spill]] }
  0x2b   : > { %v2705_v27 = vld [vmem:[%s3193_s5 + $0x8] sm:$0xff]  ;;  %v2712_v28 = vld [vmem:[%s3193_s5] sm:$0xff]  ;;  %s3200_s7 = sld [smem:[#allocation19_spill]] }
  0x2c   : > { %s3202_s10 = sld [smem:[#allocation22_spill]] }
  0x2d   : > { %s3209_s11 = sld [smem:[#allocation23_spill]] }
  0x2e   : > { %2095 = vmatpush.xpose.msk.msra.mxu0 %vm668_vm0, %v665_v2 }
  0x32   : > { %2096 = vmatpush.xpose.msk.msra.mxu0 %vm668_vm0, %v664_v3 }
  0x36   : > { %2097 = vmatpush.xpose.msk.msra.mxu0 %vm668_vm0, %v663_v4 }
  0x3a   : > { %2098 = vmatpush.xpose.msk.msra.mxu0 %vm668_vm0, %v662_v5 }
  0x3e   : > { %2099 = vmatpush.xpose.msk.msra.mxu0 %vm668_vm0, %v661_v6 }
  0x42   : > { %2100 = vmatpush.xpose.msk.msra.mxu0 %vm668_vm0, %v660_v7 }
  0x46   : > { %2101 = vmatpush.xpose.msk.msra.mxu0 %vm668_vm0, %v659_v8 }
  0x4a   : > { %2102 = vmatpush.xpose.msk.msra.mxu0 %vm668_vm0, %v658_v9 }
  0x4e   : > { %2103 = vmatpush.xpose.msk.msra.mxu0 %vm668_vm0, %v657_v10 }
  0x52   : > { %2104 = vmatpush.xpose.msk.msra.mxu0 %vm668_vm0, %v656_v11 }
  0x55   : > { %2105 = vmatmul.msk.f32.vlgmr.msra.gmra.mxu0 %vm668_vm0, %v2657_v12 }
  0xd2   : > { %v2661_v13 = vpop.f32.mrf.mxu0 }
  0xd3   : > { %735 = vrot.lane.b32.xlu0 %v2661_v13, %s3161_s24  ;;  %v733_v14 = vmul.f32 0.35355338, %v2661_v13  ;;  %s2444_s24 = smov 64  }
  0xd5   : > { %801 = vrot.lane.b32.xlu1 %v733_v14, %s3170_s25 }
  0xdb   : > { %803 = vrot.lane.b32.xlu0 %v2661_v13, %s3169_s20  ;;  %s3197_s20 = smov 120  }
 0x145   : > { %v736_v15 = vpop.permute.xlu0 %735 }
 0x146   : > { %2106 = vmatpush.xpose.msk.msra.mxu1 %vm737_vm1, %v736_v15 }
 0x147   : > { %v802_v17 = vpop.permute.xlu1 %801 }
 0x149   : > { %2107 = vmatmul.msk.f32.vlgmr.msra.gmra.mxu1 %vm737_vm1, %v733_v14 }
 0x14d   : > { %v804_v16 = vpop.permute.xlu0 %803 }
 0x14e   : > { %2109 = vmatpush.xpose.msk.msra.mxu3 %vm737_vm1, %v804_v16 }
 0x151   : > { %2110 = vmatmul.msk.f32.vlgmr.msra.gmra.mxu3 %vm737_vm1, %v802_v17 }
 0x152   : > { %2118 = vmatpush.xpose.msk.msrb.mxu3 %vm737_vm1, %v2691_v25 }
 0x156   : > { %2119 = vmatpush.xpose.msk.msrb.mxu3 %vm737_vm1, %v2698_v26 }
 0x15a   : > { %2120 = vmatpush.xpose.msk.msrb.mxu3 %vm737_vm1, %v2705_v27 }
 0x15e   : > { %2121 = vmatpush.xpose.msk.msrb.mxu3 %vm737_vm1, %v2712_v28 }
 0x1c6   : > { %v760_v19 = vpop.f32.mrf.mxu1 }
 0x1c7   : > { %v761_v20 = vadd.f32 %v760_v19, %v2676_v18 }
 0x1c9   : > { %v763_v21 = vsel %vm737_vm1, %v761_v20, -inf }
 0x1ca   : > { %764 = vmax.xlane.f32.xlu1 %v763_v21 }
 0x1d4   : > { %v826_v22 = vpop.f32.mrf.mxu3 }
 0x1d5   : > { %v827_v23 = vadd.f32 %v826_v22, %v2676_v18 }
 0x1d7   : > { %v829_v24 = vsel %vm737_vm1, %v827_v23, -inf }
 0x1d8   : > { %830 = vmax.xlane.f32.xlu0 %v829_v24 }
 0x1e3   : > { %842 = vrot.lane.b32.xlu1 %v2661_v13, %s2440_s29 }
 0x1eb   : > { %1051 = vrot.lane.b32.xlu1 %v2661_v13, %s3163_s22  ;;  %s3167_s22 = smov 112  }
 0x1ec   : > { %944 = vrot.lane.b32.xlu0 %v2661_v13, %s3162_s2  ;;  %s2723_s2 = sand.u32 1, %s2427_s30  }
 0x1ed   : > { %s3164_s29 = sshll.u32 %s2723_s2, 5 }
 0x1ee   : > { %s2728_s27 = scalar_lea.vmem [#allocation2], %s3164_s29  ;;  %s3201_s29 = smov 96  }
 0x1f4   : > { %1049 = vrot.lane.b32.xlu0 %v733_v14, %s3165_s26 }
 0x23d   : > { %v765_v29 = vpop.xlane.xlu1 %764 }
 0x23e   : > { %v766_v30 = vsub.f32 %v761_v20, %v765_v29 }
 0x240   : > { %v767_v31 = vmul.f32 1.442695, %v766_v30 }
 0x242   : > { %2301 = vpow2.f32 %v767_v31 }
 0x248   : > { %v2302_v32 = vpop.eup %2301 }
 0x249   : > { %v769_v33 = vsel %vm737_vm1, %v2302_v32, 0.0 }
 0x24a   : > { %770 = vadd.xlane.f32.xlu2 %v769_v33 }
 0x24b   : > { %v831_v35 = vpop.xlane.xlu0 %830 }
 0x24c   : > { %v832_v38 = vsub.f32 %v827_v23, %v831_v35 }
 0x24e   : > { %v833_v39 = vmul.f32 1.442695, %v832_v38  ;;  %v1242_v38 = vld [vmem:[%s3194_s9 + $0x38] sm:$0xff] }
 0x250   : > { %2303 = vpow2.f32 %v833_v39  ;;  %v1241_v39 = vld [vmem:[%s3194_s9 + $0x30] sm:$0xff] }
 0x255   : > { %v843_v34 = vpop.permute.xlu1 %842 }
 0x256   : > { %863 = vmatpush.msra.mxu2 %v843_v34  ;;  %v2304_v40 = vpop.eup %2303 }
 0x257   : > { %v835_v41 = vsel %vm737_vm1, %v2304_v40, 0.0 }
 0x25d   : > { %v1052_v36 = vpop.permute.xlu1 %1051 }
 0x25e   : > { %v945_v37 = vpop.permute.xlu0 %944  ;;  %2132 = vmatpush.xpose.msk.msra.mxu3 %vm737_vm1, %v1052_v36 }
 0x25f   : > { %2123 = vmatpush.xpose.msk.msrb.mxu2 %vm737_vm1, %v945_v37  ;;  %v2448_v37 = vmov 32.0  }
 0x262   : > { %775 = vrot.lane.b32.xlu2 %v2661_v13, %s2444_s24  ;;  %s2447_s24 = smov 40  }
 0x266   : > { %v1050_v51 = vpop.permute.xlu0 %1049 }
 0x28b   : > { %836 = vadd.xlane.f32.xlu2 %v835_v41  ;;  %v1240_v41 = vld [vmem:[%s3194_s9 + $0x28] sm:$0xff] }
 0x2a3   : > { %942 = vrot.lane.b32.xlu2 %v733_v14, %s3167_s22 }
 0x2bd   : > { %v771_v42 = vpop.xlane.xlu2 %770 }
 0x2be   : > { %2305 = vrcp.f32 %v771_v42 }
 0x2c4   : > { %v2306_v43 = vpop.eup %2305 }
 0x2c5   : > { %v776_v44 = vpop.permute.xlu2 %775  ;;  %v773_v45 = vmul.f32 %v2306_v43, %v2302_v32  ;;  %v1239_v43 = vld [vmem:[%s3194_s9 + $0x20] sm:$0xff] }
 0x2c6   : > { %796 = vmatpush.msrb.mxu1 %v776_v44 }
 0x2c7   : > { %774 = vst.msk [vmem:[%s2728_s27] sm:$0xff] %vm737_vm1, %v773_v45  ;;  %2108 = vmatmul.msk.f32.vlgmr.msrb.gmra.mxu1 %vm737_vm1, %v773_v45  ;;  %v1238_v45 = vld [vmem:[%s3194_s9 + $0x18] sm:$0xff] }
 0x2fe   : > { %v837_v46 = vpop.xlane.xlu2 %836 }
 0x2ff   : > { %2307 = vrcp.f32 %v837_v46 }
 0x305   : > { %v2308_v47 = vpop.eup %2307 }
 0x306   : > { %v839_v48 = vmul.f32 %v2308_v47, %v2304_v40  ;;  %v943_v49 = vpop.permute.xlu2 %942  ;;  %v1237_v47 = vld [vmem:[%s3194_s9 + $0x10] sm:$0xff] }
 0x308   : > { %2111 = vst.msk [vmem:[%s2728_s27 + $0x8] sm:$0xff] %vm737_vm1, %v839_v48  ;;  %2112 = vmatmul.msk.f32.vlgmr.msra.gmra.mxu2 %vm737_vm1, %v839_v48 }
 0x310   : > { %2124 = vmatmul.msk.f32.vlgmr.msrb.gmra.mxu2 %vm737_vm1, %v943_v49  ;;  %v1236_v49 = vld [vmem:[%s3194_s9 + $0x8] sm:$0xff] }
 0x344   : > { %v798_v50 = vpop.f32.mrf.mxu1 }
 0x345   : > { %2122 = vmatmul.msk.f32.vlgmr.msrb.gmra.mxu3 %vm737_vm1, %v798_v50 }
 0x34d   : > { %2133 = vmatmul.msk.f32.vlgmr.msra.gmra.mxu3 %vm737_vm1, %v1050_v51 }
 0x38b   : > { %v2739_v52 = vpop.f32.mrf.mxu2 }
 0x393   : > { %v967_v53 = vpop.f32.mrf.mxu2 }
 0x394   : > { %v968_v54 = vadd.f32 %v967_v53, %v2676_v18 }
 0x396   : > { %v970_v55 = vsel %vm737_vm1, %v968_v54, -inf }
 0x397   : > { %971 = vmax.xlane.f32.xlu1 %v970_v55 }
 0x3c8   : > { %v2743_v56 = vpop.f32.mrf.mxu3 }
 0x3d0   : > { %v1074_v57 = vpop.f32.mrf.mxu3 }
 0x3d1   : > { %v1075_v58 = vadd.f32 %v1074_v57, %v2676_v18 }
 0x3d3   : > { %v1077_v59 = vsel %vm737_vm1, %v1075_v58, -inf }
 0x3d4   : > { %1078 = vmax.xlane.f32.xlu0 %v1077_v59  ;;  %v1198_v59 = vld [vmem:[%s3196_s8 + $0x10] sm:$0xff] }
 0x3e8   : > { %983 = vrot.lane.b32.xlu0 %v2661_v13, %s2446_s28 }
 0x3f0   : > { %876 = vrot.lane.b32.xlu0 %v2698_v26, %s3170_s25 }
 0x3f8   : > { %1122 = vrot.lane.b32.xlu0 %v2691_v25, %s3165_s26 }
 0x400   : > { %1120 = vrot.lane.b32.xlu0 %v2698_v26, %s3165_s26 }
 0x408   : > { %1118 = vrot.lane.b32.xlu0 %v2705_v27, %s3165_s26 }
 0x40a   : > { %v972_v60 = vpop.xlane.xlu1 %971 }
 0x40b   : > { %v973_v61 = vsub.f32 %v968_v54, %v972_v60  ;;  %v1197_v60 = vld [vmem:[%s3196_s8 + $0x8] sm:$0xff] }
 0x40d   : > { %v974_v62 = vmul.f32 1.442695, %v973_v61  ;;  %v1196_v61 = vld [vmem:[%s3196_s8] sm:$0xff] }
 0x40f   : > { %2309 = vpow2.f32 %v974_v62 }
 0x410   : > { %1009 = vrot.lane.b32.xlu0 %v2712_v28, %s3167_s22 }
 0x415   : > { %v2310_v63 = vpop.eup %2309 }
 0x416   : > { %v976_v0 = vsel %vm737_vm1, %v2310_v63, 0.0 }
 0x417   : > { %977 = vadd.xlane.f32.xlu2 %v976_v0 }
 0x42f   : > { %878 = vrot.lane.b32.xlu2 %v2691_v25, %s3170_s25 }
 0x437   : > { %1015 = vrot.lane.b32.xlu2 %v2691_v25, %s3167_s22 }
 0x43f   : > { %1013 = vrot.lane.b32.xlu2 %v2698_v26, %s3167_s22 }
 0x447   : > { %v1079_v1 = vpop.xlane.xlu0 %1078  ;;  %1116 = vrot.lane.b32.xlu2 %v2712_v28, %s3165_s26 }
 0x448   : > { %v1080_v2 = vsub.f32 %v1075_v58, %v1079_v1  ;;  %v1199_v58 = vld [vmem:[%s3196_s8 + $0x18] sm:$0xff] }
 0x44a   : > { %v1081_v3 = vmul.f32 1.442695, %v1080_v2 }
 0x44c   : > { %2311 = vpow2.f32 %v1081_v3 }
 0x452   : > { %v2312_v4 = vpop.eup %2311 }
 0x453   : > { %v1083_v5 = vsel %vm737_vm1, %v2312_v4, 0.0 }
 0x454   : > { %1084 = vadd.xlane.f32.xlu1 %v1083_v5 }
 0x45a   : > { %v984_v6 = vpop.permute.xlu0 %983 }
 0x45b   : > { %1004 = vmatpush.msra.mxu2 %v984_v6 }
 0x462   : > { %v877_v11 = vpop.permute.xlu0 %876 }
 0x46a   : > { %v1123_v16 = vpop.permute.xlu0 %1122 }
 0x46b   : > { %2136 = vmatpush.xpose.msk.msrb.mxu3 %vm737_vm1, %v1123_v16 }
 0x46d   : > { %1090 = vrot.lane.b32.xlu1 %v2661_v13, %s2447_s24  ;;  %s2213_s24 = sshll.u32 %s2640_s23, 4 }
 0x46e   : > { %s645_s5 = scalar_lea.vmem %s3195_s4, %s2213_s24  ;;  %s3199_s4 = smov 88  }
 0x46f   : > { %v654_v55 = vld [vmem:[%s645_s5] sm:$0xff]  ;;  %v655_v57 = vld [vmem:[%s645_s5 + $0x8] sm:$0xff] }
 0x472   : > { %v1121_v17 = vpop.permute.xlu0 %1120 }
 0x473   : > { %2137 = vmatpush.xpose.msk.msrb.mxu3 %vm737_vm1, %v1121_v17  ;;  %v2892_v17 = vld [vmem:[%s3202_s10 + $0x8] sm:$0xff] }
 0x475   : > { %874 = vrot.lane.b32.xlu1 %v2705_v27, %s3170_s25 }
 0x47a   : > { %v1119_v19 = vpop.permute.xlu0 %1118 }
 0x47b   : > { %2138 = vmatpush.xpose.msk.msrb.mxu3 %vm737_vm1, %v1119_v19 }
 0x47d   : > { %872 = vrot.lane.b32.xlu1 %v2712_v28, %s3170_s25  ;;  %s3205_s25 = smov 104  }
 0x482   : > { %v1010_v26 = vpop.permute.xlu0 %1009 }
 0x485   : > { %1011 = vrot.lane.b32.xlu1 %v2705_v27, %s3167_s22  ;;  %s3208_s22 = smov 80  }
 0x48a   : > { %v978_v7 = vpop.xlane.xlu2 %977 }
 0x48b   : > { %2313 = vrcp.f32 %v978_v7 }
 0x491   : > { %v2314_v8 = vpop.eup %2313 }
 0x492   : > { %v980_v9 = vmul.f32 %v2314_v8, %v2310_v63  ;;  %v879_v10 = vpop.permute.xlu2 %878 }
 0x493   : > { %2113 = vmatpush.xpose.msk.msra.mxu1 %vm737_vm1, %v879_v10  ;;  %v2294_v10 = vld [vmem:[%s3198_s6] ss:$0 sm:$0xff] }
 0x494   : > { %2125 = vst.msk [vmem:[%s2728_s27 + $0x10] sm:$0xff] %vm737_vm1, %v980_v9  ;;  %2126 = vmatmul.msk.f32.vlgmr.msra.gmra.mxu2 %vm737_vm1, %v980_v9 }
 0x497   : > { %2114 = vmatpush.xpose.msk.msra.mxu1 %vm737_vm1, %v877_v11 }
 0x49a   : > { %v1016_v20 = vpop.permute.xlu2 %1015 }
 0x4a2   : > { %v1014_v23 = vpop.permute.xlu2 %1013 }
 0x4aa   : > { %v1117_v25 = vpop.permute.xlu2 %1116 }
 0x4ab   : > { %2139 = vmatpush.xpose.msk.msrb.mxu3 %vm737_vm1, %v1117_v25 }
 0x4c7   : > { %v1085_v13 = vpop.xlane.xlu1 %1084 }
 0x4c8   : > { %2315 = vrcp.f32 %v1085_v13 }
 0x4c9   : > { %2317 = vrcp.f32 %v2448_v37 }
 0x4ce   : > { %v2316_v14 = vpop.eup %2315 }
 0x4cf   : > { %v1087_v15 = vmul.f32 %v2316_v14, %v2312_v4  ;;  %v2318_v40 = vpop.eup %2317  ;;  %v2295_v14 = vld [vmem:[%s3200_s7] ss:$0 sm:$0xff]  ;;  %s1903_s7 = scalar_lea.sflag [#allocation3], %s2723_s2 }
 0x4d0   : > { %vm1165_vm2 = vweird.f32 %v2318_v40 }
 0x4d1   : > { %2134 = vst.msk [vmem:[%s2728_s27 + $0x18] sm:$0xff] %vm737_vm1, %v1087_v15 }
 0x4df   : > { %v1091_v18 = vpop.permute.xlu1 %1090 }
 0x4e0   : > { %1111 = vmatpush.msrb.mxu2 %v1091_v18  ;;  %v2899_v18 = vld [vmem:[%s3202_s10] sm:$0xff] }
 0x4e1   : > { %2135 = vmatmul.msk.f32.vlgmr.msrb.gmra.mxu2 %vm737_vm1, %v1087_v15 }
 0x4e2   : > { %2141 = vmatpush.xpose.msk.msra.mxu2 %vm668_vm0, %v1199_v58 }
 0x4e6   : > { %2142 = vmatpush.xpose.msk.msra.mxu2 %vm668_vm0, %v1198_v59 }
 0x4e7   : > { %v875_v21 = vpop.permute.xlu1 %874 }
 0x4e8   : > { %2115 = vmatpush.xpose.msk.msra.mxu1 %vm737_vm1, %v875_v21 }
 0x4ea   : > { %2143 = vmatpush.xpose.msk.msra.mxu2 %vm668_vm0, %v1197_v60 }
 0x4ee   : > { %2144 = vmatpush.xpose.msk.msra.mxu2 %vm668_vm0, %v1196_v61 }
 0x4ef   : > { %v873_v22 = vpop.permute.xlu1 %872 }
 0x4f0   : > { %2116 = vmatpush.xpose.msk.msra.mxu1 %vm737_vm1, %v873_v22 }
 0x4f3   : > { %2117 = vmatmul.msk.f32.vlgmr.msra.gmra.mxu1 %vm737_vm1, %v2739_v52  ;;  %v1235_v52 = vld [vmem:[%s3194_s9] sm:$0xff] }
 0x4f4   : > { %2127 = vmatpush.xpose.msk.msrb.mxu1 %vm737_vm1, %v1016_v20 }
 0x4f7   : > { %v1012_v24 = vpop.permute.xlu1 %1011 }
 0x4f8   : > { %2128 = vmatpush.xpose.msk.msrb.mxu1 %vm737_vm1, %v1014_v23 }
 0x4fc   : > { %2129 = vmatpush.xpose.msk.msrb.mxu1 %vm737_vm1, %v1012_v24 }
 0x500   : > { %2130 = vmatpush.xpose.msk.msrb.mxu1 %vm737_vm1, %v1010_v26 }
 0x504   : > { %2146 = vmatpush.xpose.msk.msra.mxu1 %vm668_vm0, %v1242_v38 }
 0x508   : > { %2147 = vmatpush.xpose.msk.msra.mxu1 %vm668_vm0, %v1241_v39 }
 0x50c   : > { %2148 = vmatpush.xpose.msk.msra.mxu1 %vm668_vm0, %v1240_v41 }
 0x510   : > { %2149 = vmatpush.xpose.msk.msra.mxu1 %vm668_vm0, %v1239_v43 }
 0x514   : > { %2150 = vmatpush.xpose.msk.msra.mxu1 %vm668_vm0, %v1238_v45 }
 0x517   : > { %v1006_v27 = vpop.f32.mrf.mxu2 }
 0x518   : > { %2131 = vmatmul.msk.f32.vlgmr.msrb.gmra.mxu1 %vm737_vm1, %v1006_v27 }
 0x519   : > { %2151 = vmatpush.xpose.msk.msra.mxu1 %vm668_vm0, %v1237_v47 }
 0x51d   : > { %2152 = vmatpush.xpose.msk.msra.mxu1 %vm668_vm0, %v1236_v49 }
 0x521   : > { %2153 = vmatpush.xpose.msk.msra.mxu1 %vm668_vm0, %v1235_v52 }
 0x524   : > { %2154 = vmatmul.msk.f32.vlgmr.msra.gmra.mxu1 %vm668_vm0, %v654_v55 }
 0x52c   : > { %2155 = vmatmul.msk.f32.gmra.mxu1 %vm668_vm0, %v655_v57 }
 0x564   : > { %v1113_v28 = vpop.f32.mrf.mxu2 }
 0x565   : > { %2140 = vmatmul.msk.f32.vlgmr.msrb.gmra.mxu3 %vm737_vm1, %v1113_v28 }
 0x570   : > { %v908_v29 = vpop.f32.mrf.mxu1 }
 0x571   : > { %v940_v31 = vadd.f32 %v2743_v56, %v908_v29 }
 0x595   : > { %v1045_v30 = vpop.f32.mrf.mxu1 }
 0x596   : > { %v1048_v32 = vadd.f32 %v1045_v30, %v940_v31 }
 0x5a1   : > { %v2859_v1 = vpop.f32.mrf.mxu1 }
 0x5a9   : > { %v2861_v7 = vpop.f32.mrf.mxu1 }
 0x5aa   : > { %v2865_v8 = vpack.i.bf16 %v2859_v1, %v2861_v7  ;;  %1380 = vrot.lane.b32.xlu0 %v2861_v7, %s3197_s20  ;;  %2156 = vmatpush.xpose.msk.msra.mxu3 %vm737_vm1, %v2861_v7 }
 0x5ae   : > { %2157 = vmatpush.xpose.msk.msra.mxu3 %vm737_vm1, %v2859_v1 }
 0x5b2   : > { %1378 = vrot.lane.b32.xlu0 %v2859_v1, %s3197_s20 }
 0x5e8   : > { %v1152_v33 = vpop.f32.mrf.mxu3 }
 0x5e9   : > { %v1155_v34 = vadd.f32 %v1152_v33, %v1048_v32 }
 0x5eb   : > { %v1156_v35 = vadd.f32 %v1155_v34, %v2657_v12  ;;  %v1161_v12 = vmul.f32 32.0, %v2318_v40  ;;  %v2922_v34 = vld [vmem:[%s3202_s10 + $0x10] sm:$0xff] }
 0x5ed   : > { %v1157_v36 = vsel %vm668_vm0, %v1156_v35, 0.0  ;;  %v1162_v42 = vsub.f32 1.0, %v1161_v12 }
 0x5ee   : > { %1158 = vadd.xlane.f32.xlu1 %v1157_v36 }
 0x5ef   : > { %v1163_v44 = vmul.f32 %v2318_v40, %v1162_v42  ;;  %v2935_v42 = vld [vmem:[%s3202_s10 + $0x18] sm:$0xff] }
 0x5f1   : > { %v1164_v46 = vadd.f32 %v2318_v40, %v1163_v44 }
 0x5f3   : > { %v2824_v48 = vsel %vm1165_vm2, %v2318_v40, %v1164_v46 }
 0x61c   : > { %v1381_v22 = vpop.permute.xlu0 %1380 }
 0x61d   : > { %2160 = vmatpush.xpose.msk.msrb.mxu2 %vm737_vm1, %v1381_v22 }
 0x624   : > { %v1379_v28 = vpop.permute.xlu0 %1378 }
 0x625   : > { %2161 = vmatpush.xpose.msk.msrb.mxu2 %vm737_vm1, %v1379_v28 }
 0x661   : > { %v1159_v50 = vpop.xlane.xlu1 %1158 }
 0x662   : > { %v1167_v51 = vmul.f32 %v2824_v48, %v1159_v50 }
 0x664   : > { %v1168_v53 = vsub.f32 %v1156_v35, %v1167_v51 }
 0x666   : > { %v1169_v54 = vmul.f32 %v1168_v53, %v1168_v53 }
 0x668   : > { %v1170_v56 = vsel %vm668_vm0, %v1169_v54, 0.0 }
 0x669   : > { %1171 = vadd.xlane.f32.xlu2 %v1170_v56 }
 0x681   : > { %2275 = vrot.lane.b32.xlu2 %v2865_v8, %s3199_s4  ;;  %s3203_s4 = smov 112  }
 0x689   : > { %2280 = vrot.lane.b32.xlu2 %v2865_v8, %s3201_s29  ;;  %s3204_s29 = sld [smem:[#allocation15_spill]] }
 0x68f   : > { %s648_s5 = scalar_lea.vmem %s3204_s29, %s2640_s23  ;;  %s3206_s29 = sshll.u32 %s2723_s2, 5 }
 0x690   : > { %v2915_v30 = vld [vmem:[%s648_s5] ss:$0 sm:$0xff]  ;;  %s2947_s5 = scalar_lea.vmem [#allocation4], %s3206_s29 }
 0x691   : > { %1456 = vrot.lane.b32.xlu2 %v2892_v17, %s3197_s20 }
 0x699   : > { %1454 = vrot.lane.b32.xlu2 %v2899_v18, %s3197_s20 }
 0x6a1   : > { %1526 = vrot.lane.b32.xlu2 %v2859_v1, %s3203_s4 }
 0x6dc   : > { %v1172_v62 = vpop.xlane.xlu2 %1171 }
 0x6dd   : > { %v1173_v63 = vmul.f32 %v1172_v62, %v2824_v48 }
 0x6df   : > { %v1174_v0 = vadd.f32 1e-05, %v1173_v63 }
 0x6e1   : > { %2319 = vrsqrt.f32 %v1174_v0  ;;  %vm1181_vm4 = vweird.f32 %v1174_v0 }
 0x6e4   : > { %v2276_v19 = vpop.permute.xlu2 %2275 }
 0x6e5   : > { %v2278_v20 = vunpack.i.h.bf16 %v2276_v19  ;;  %v2277_v21 = vunpack.i.l.bf16 %v2276_v19 }
 0x6e7   : > { %v2320_v2 = vpop.eup %2319  ;;  %1444 = vmatpush.msrb.mxu3 %v2277_v21 }
 0x6e8   : > { %v1176_v3 = vmul.f32 %v2320_v2, %v1174_v0  ;;  %vm1182_vm3 = vweird.f32 %v2320_v2 }
 0x6e9   : > { %vm1183_vm5 = vmor %vm1181_vm4, %vm1182_vm3  ;;  %1445 = vmatpush.msrb.mxu3 %v2278_v20 }
 0x6ea   : > { %v1177_v4 = vmul.f32 %v2320_v2, %v1176_v3 }
 0x6ec   : > { %v1178_v5 = vmul.f32 0.5, %v1177_v4  ;;  %v2281_v23 = vpop.permute.xlu2 %2280 }
 0x6ed   : > { %v2282_v24 = vunpack.i.l.bf16 %v2281_v23  ;;  %v2283_v25 = vunpack.i.h.bf16 %v2281_v23 }
 0x6ee   : > { %v1179_v6 = vsub.f32 1.5, %v1178_v5 }
 0x6ef   : > { %1370 = vmatpush.msrb.mxu0 %v2282_v24 }
 0x6f0   : > { %v1180_v9 = vmul.f32 %v2320_v2, %v1179_v6 }
 0x6f1   : > { %1371 = vmatpush.msrb.mxu0 %v2283_v25 }
 0x6f2   : > { %v1184_v11 = vsel %vm1183_vm5, %v2320_v2, %v1180_v9 }
 0x6f3   : > { %v1185_v13 = vmul.f32 %v1184_v11, %v1168_v53 }
 0x6f4   : > { %v1457_v55 = vpop.permute.xlu2 %1456 }
 0x6f5   : > { %v1190_v15 = vmul.f32 %v2294_v10, %v1185_v13 }
 0x6f7   : > { %v2881_v16 = vadd.f32 %v2295_v14, %v1190_v15 }
 0x6f9   : > { %2145 = vmatmul.msk.f32.vlgmr.msra.gmra.mxu2 %vm668_vm0, %v2881_v16 }
 0x6fa   : > { %2170 = vmatpush.xpose.msk.msra.mxu2 %vm737_vm1, %v2935_v42 }
 0x6fc   : > { %v1455_v58 = vpop.permute.xlu2 %1454 }
 0x6fe   : > { %2171 = vmatpush.xpose.msk.msra.mxu2 %vm737_vm1, %v2922_v34 }
 0x702   : > { %2172 = vmatpush.xpose.msk.msra.mxu2 %vm737_vm1, %v2892_v17 }
 0x704   : > { %v1527_v61 = vpop.permute.xlu2 %1526 }
 0x706   : > { %2173 = vmatpush.xpose.msk.msra.mxu2 %vm737_vm1, %v2899_v18 }
 0x77c   : > { %v1232_v26 = vpop.f32.mrf.mxu2 }
 0x77d   : > { %v1301_v27 = vmul.f32 0.35355338, %v1232_v26 }
 0x77f   : > { %1638 = vrot.lane.b32.xlu2 %v1301_v27, %s3205_s25  ;;  %1376 = vrot.lane.b32.xlu0 %v1301_v27, %s3197_s20 }
 0x780   : > { %2158 = vmatmul.msk.f32.vlgmr.msra.gmra.mxu3 %vm737_vm1, %v1301_v27 }
 0x7f1   : > { %v1377_v29 = vpop.permute.xlu0 %1376 }
 0x7f2   : > { %2162 = vmatmul.msk.f32.vlgmr.msrb.gmra.mxu2 %vm737_vm1, %v1377_v29 }
 0x803   : > { %v1331_v40 = vpop.f32.mrf.mxu3 }
 0x804   : > { %v1332_v12 = vadd.f32 %v2915_v30, %v1331_v40 }
 0x806   : > { %v1335_v41 = vsel %vm1334_vm6, %v1332_v12, -inf }
 0x875   : > { %v1405_v31 = vpop.f32.mrf.mxu2 }
 0x876   : > { %v1406_v32 = vadd.f32 %v2915_v30, %v1405_v31 }
 0x878   : > { %v1408_v33 = vsel %vm1334_vm6, %v1406_v32, -inf }
 0x879   : > { %1409 = vmax.xlane.f32.xlu0 %v1408_v33 }
 0x88d   : > { %1458 = vrot.lane.b32.xlu0 %v2922_v34, %s3197_s20 }
 0x895   : > { %1642 = vrot.lane.b32.xlu0 %v2861_v7, %s3205_s25 }
 0x89d   : > { %1524 = vrot.lane.b32.xlu0 %v1301_v27, %s3203_s4 }
 0x8ec   : > { %v1410_v35 = vpop.xlane.xlu0 %1409 }
 0x8ed   : > { %v1411_v36 = vsub.f32 %v1406_v32, %v1410_v35 }
 0x8ef   : > { %v1412_v37 = vmul.f32 1.442695, %v1411_v36 }
 0x8f1   : > { %2321 = vpow2.f32 %v1412_v37 }
 0x8f7   : > { %v2322_v38 = vpop.eup %2321 }
 0x8f8   : > { %v1414_v39 = vsel %vm1334_vm6, %v2322_v38, 0.0 }
 0x8f9   : > { %1415 = vadd.xlane.f32.xlu1 %v1414_v39 }
 0x8ff   : > { %v1459_v56 = vpop.permute.xlu0 %1458 }
 0x901   : > { %1336 = vmax.xlane.f32.xlu1 %v1335_v41 }
 0x907   : > { %v1643_v59 = vpop.permute.xlu0 %1642 }
 0x90f   : > { %v1525_v62 = vpop.permute.xlu0 %1524 }
 0x96c   : > { %v1416_v43 = vpop.xlane.xlu1 %1415 }
 0x96d   : > { %2323 = vrcp.f32 %v1416_v43 }
 0x973   : > { %v2324_v44 = vpop.eup %2323 }
 0x974   : > { %v1418_v45 = vmul.f32 %v2324_v44, %v2322_v38  ;;  %v1337_v46 = vpop.xlane.xlu1 %1336 }
 0x975   : > { %v1338_v47 = vsub.f32 %v1332_v12, %v1337_v46 }
 0x976   : > { %2163 = vst.msk [vmem:[%s2947_s5 + $0x8] sm:$0xff] %vm1334_vm6, %v1418_v45  ;;  %2164 = vmatmul.msk.f32.vlgmr.msrb.gmra.mxu3 %vm1334_vm6, %v1418_v45 }
 0x977   : > { %v1339_v49 = vmul.f32 1.442695, %v1338_v47 }
 0x979   : > { %2325 = vpow2.f32 %v1339_v49 }
 0x97f   : > { %v2326_v50 = vpop.eup %2325 }
 0x980   : > { %v1341_v51 = vsel %vm1334_vm6, %v2326_v50, 0.0 }
 0x981   : > { %1342 = vadd.xlane.f32.xlu1 %v1341_v51 }
 0x99a   : > { %1460 = vrot.lane.b32.xlu1 %v2935_v42, %s3197_s20  ;;  %s3207_s20 = smov 72  }
 0x9a2   : > { %1528 = vrot.lane.b32.xlu1 %v2861_v7, %s3203_s4 }
 0x9aa   : > { %1640 = vrot.lane.b32.xlu1 %v2859_v1, %s3205_s25  ;;  %v1639_v1 = vpop.permute.xlu2 %1638 }
 0x9f4   : > { %v1343_v52 = vpop.xlane.xlu1 %1342 }
 0x9f5   : > { %2327 = vrcp.f32 %v1343_v52 }
 0x9f9   : > { %v1447_v63 = vpop.f32.mrf.mxu3 }
 0x9fb   : > { %v2328_v53 = vpop.eup %2327 }
 0x9fc   : > { %v1345_v54 = vmul.f32 %v2328_v53, %v2326_v50 }
 0x9fe   : > { %1346 = vst.msk [vmem:[%s2947_s5] sm:$0xff] %vm1334_vm6, %v1345_v54  ;;  %2159 = vmatmul.msk.f32.vlgmr.msrb.gmra.mxu0 %vm1334_vm6, %v1345_v54 }
 0xa0c   : > { %v1461_v57 = vpop.permute.xlu1 %1460 }
 0xa0d   : > { %2165 = vmatpush.xpose.msk.msra.mxu0 %vm737_vm1, %v1461_v57  ;;  %v1788_v57 = vld [vmem:[%s3149_s13 + $0x18] sm:$0xff] }
 0xa11   : > { %2166 = vmatpush.xpose.msk.msra.mxu0 %vm737_vm1, %v1459_v56 }
 0xa14   : > { %v1529_v60 = vpop.permute.xlu1 %1528 }
 0xa15   : > { %2167 = vmatpush.xpose.msk.msra.mxu0 %vm737_vm1, %v1457_v55  ;;  %2175 = vmatpush.xpose.msk.msra.mxu3 %vm737_vm1, %v1529_v60  ;;  %v1832_v60 = vld [vmem:[%s3151_s15 + $0x18] sm:$0xff] }
 0xa19   : > { %2168 = vmatpush.xpose.msk.msra.mxu0 %vm737_vm1, %v1455_v58  ;;  %2176 = vmatpush.xpose.msk.msra.mxu3 %vm737_vm1, %v1527_v61  ;;  %v1786_v58 = vld [vmem:[%s3149_s13 + $0x8] sm:$0xff]  ;;  %v1831_v61 = vld [vmem:[%s3151_s15 + $0x10] sm:$0xff] }
 0xa1c   : > { %v1641_v0 = vpop.permute.xlu1 %1640  ;;  %2169 = vmatmul.msk.f32.vlgmr.msra.gmra.mxu0 %vm737_vm1, %v1447_v63  ;;  %2177 = vmatmul.msk.f32.vlgmr.msra.gmra.mxu3 %vm737_vm1, %v1525_v62 }
 0xa1d   : > { %2185 = vmatpush.xpose.msk.msrb.mxu0 %vm737_vm1, %v1643_v59  ;;  %v1785_v59 = vld [vmem:[%s3149_s13] sm:$0xff] }
 0xa21   : > { %2186 = vmatpush.xpose.msk.msrb.mxu0 %vm737_vm1, %v1641_v0 }
 0xa24   : > { %2187 = vmatmul.msk.f32.vlgmr.msrb.gmra.mxu0 %vm737_vm1, %v1639_v1  ;;  %v1830_v1 = vld [vmem:[%s3151_s15 + $0x8] sm:$0xff] }
 0xa25   : > { %2195 = vmatpush.xpose.msk.msra.mxu0 %vm668_vm0, %v1788_v57 }
 0xa7b   : > { %v1373_v2 = vpop.f32.mrf.mxu0 }
 0xa7c   : > { %2174 = vmatmul.msk.f32.vlgmr.msra.gmra.mxu2 %vm737_vm1, %v1373_v2 }
 0xa99   : > { %v2974_v3 = vpop.f32.mrf.mxu0 }
 0xa9f   : > { %v1553_v4 = vpop.f32.mrf.mxu3 }
 0xaa0   : > { %v1554_v5 = vadd.f32 %v2915_v30, %v1553_v4 }
 0xaa1   : > { %v1667_v6 = vpop.f32.mrf.mxu0 }
 0xaa2   : > { %v1668_v7 = vadd.f32 %v2915_v30, %v1667_v6  ;;  %v1556_v9 = vsel %vm1334_vm6, %v1554_v5, -inf }
 0xaa3   : > { %1557 = vmax.xlane.f32.xlu0 %v1556_v9  ;;  %v3055_v9 = vld [vmem:[%s3209_s11] ss:$0 sm:$0xff] }
 0xaa4   : > { %v1670_v10 = vsel %vm1334_vm6, %v1668_v7, -inf }
 0xaa5   : > { %1671 = vmax.xlane.f32.xlu1 %v1670_v10 }
 0xab7   : > { %2285 = vrot.lane.b32.xlu0 %v2865_v8, %s3207_s20 }
 0xabf   : > { %1604 = vrot.lane.b32.xlu0 %v2935_v42, %s3203_s4 }
 0xac7   : > { %1602 = vrot.lane.b32.xlu0 %v2922_v34, %s3203_s4 }
 0xacf   : > { %1712 = vrot.lane.b32.xlu0 %v2899_v18, %s3205_s25 }
 0xaff   : > { %v1521_v41 = vpop.f32.mrf.mxu2 }
 0xb00   : > { %v1522_v44 = vadd.f32 %v1521_v41, %v2974_v3 }
 0xb16   : > { %v1558_v11 = vpop.xlane.xlu0 %1557 }
 0xb17   : > { %v1559_v13 = vsub.f32 %v1554_v5, %v1558_v11 }
 0xb18   : > { %v1672_v14 = vpop.xlane.xlu1 %1671 }
 0xb19   : > { %v1560_v15 = vmul.f32 1.442695, %v1559_v13  ;;  %v1673_v19 = vsub.f32 %v1668_v7, %v1672_v14  ;;  %v3060_v13 = vld [vmem:[%s3148_s12] ss:$0 sm:$0xff] }
 0xb1b   : > { %2329 = vpow2.f32 %v1560_v15  ;;  %v1674_v20 = vmul.f32 1.442695, %v1673_v19  ;;  %v1829_v19 = vld [vmem:[%s3151_s15] sm:$0xff] }
 0xb1d   : > { %2331 = vpow2.f32 %v1674_v20  ;;  %v2299_v20 = vld [vmem:[%s3150_s14] ss:$0 sm:$0xff] }
 0xb21   : > { %v2330_v21 = vpop.eup %2329 }
 0xb22   : > { %v1562_v22 = vsel %vm1334_vm6, %v2330_v21, 0.0 }
 0xb23   : > { %v2332_v23 = vpop.eup %2331  ;;  %1563 = vadd.xlane.f32.xlu1 %v1562_v22 }
 0xb24   : > { %v1676_v24 = vsel %vm1334_vm6, %v2332_v23, 0.0 }
 0xb25   : > { %1677 = vadd.xlane.f32.xlu2 %v1676_v24  ;;  %v2300_v24 = vld [vmem:[%s3152_s16] ss:$0 sm:$0xff] }
 0xb29   : > { %v2286_v25 = vpop.permute.xlu0 %2285 }
 0xb2a   : > { %v2287_v26 = vunpack.i.l.bf16 %v2286_v25  ;;  %v2288_v27 = vunpack.i.h.bf16 %v2286_v25 }
 0xb2c   : > { %1706 = vmatpush.msrb.mxu2 %v2287_v26 }
 0xb2e   : > { %1707 = vmatpush.msrb.mxu2 %v2288_v27 }
 0xb30   : > { %2200 = vmatpush.xpose.msk.msra.mxu2 %vm668_vm0, %v1832_v60 }
 0xb31   : > { %v1605_v28 = vpop.permute.xlu0 %1604 }
 0xb32   : > { %2180 = vmatpush.xpose.msk.msrb.mxu1 %vm737_vm1, %v1605_v28 }
 0xb34   : > { %2201 = vmatpush.xpose.msk.msra.mxu2 %vm668_vm0, %v1831_v61 }
 0xb38   : > { %2202 = vmatpush.xpose.msk.msra.mxu2 %vm668_vm0, %v1830_v1 }
 0xb39   : > { %v1603_v29 = vpop.permute.xlu0 %1602 }
 0xb3a   : > { %2181 = vmatpush.xpose.msk.msrb.mxu1 %vm737_vm1, %v1603_v29 }
 0xb3c   : > { %1718 = vrot.lane.b32.xlu1 %v2935_v42, %s3205_s25  ;;  %2203 = vmatpush.xpose.msk.msra.mxu2 %vm668_vm0, %v1829_v19 }
 0xb3d   : > { %2290 = vrot.lane.b32.xlu2 %v2865_v8, %s3208_s22  ;;  %s1923_s22 = sshll.u32 %s2728_s27, 4  ;;  %s1924_s22 = int_to_ptr.vmem [resolvable:$true] %s1923_s22 }
 0xb41   : > { %v1713_v40 = vpop.permute.xlu0 %1712 }
 0xb44   : > { %1714 = vrot.lane.b32.xlu1 %v2892_v17, %s3205_s25 }
 0xb45   : > { %1716 = vrot.lane.b32.xlu2 %v2922_v34, %s3205_s25  ;;  %s2361_s25 = scalar_lea.hbm %s3154_s18, 64 }
 0xb4c   : > { %1598 = vrot.lane.b32.xlu1 %v2899_v18, %s3203_s4 }
 0xb4d   : > { %1600 = vrot.lane.b32.xlu2 %v2892_v17, %s3203_s4  ;;  %s2214_s4 = sshll.u32 %s2572_s1, 5 }
 0xb4e   : > { %s1922_s24 = scalar_lea.hbm %s3154_s18, %s2214_s4  ;;  %s1939_s20 = scalar_lea.hbm %s3155_s19, %s2214_s4 }
 0xb4f   : > { %s1925_s6 = sshll.u32 %s1922_s24, 4  ;;  %s1926_s6 = int_to_ptr.hbm [resolvable:$true] %s1925_s6 }
 0xb50   : > { %s2355_s8 = sshra.s32 %s1926_s6, 4  ;;  %s2356_s8 = int_to_ptr.hbm [resolvable:$true] %s2355_s8 }
 0xb51   : > { %s2357_s9 = scalar_lea.hbm %s2356_s8, 32  ;;  %p2362_p0 = scmp.lt.s32.totalorder %s2356_s8, %s3154_s18 }
 0xb52   : > { %p2358_p11 = scmp.ne.s32.totalorder %s2356_s8, %s2357_s9  ;;  %p2363_p1 = scmp.lt.s32.totalorder %s2361_s25, %s2357_s9 }
 0xb54   : > { %p2359_p12 = pnand %p2358_p11, %p2589_p5  ;;  %p2364_p2 = por %p2363_p1, %p2362_p0 }
 0xb56   : > { %p2360_p13 = pneg %p2359_p12 }
 0xb58   : > { %p2365_p3 = pnand %p2364_p2, %p2360_p13 }
 0xb96   : > { %v1564_v8 = vpop.xlane.xlu1 %1563 }
 0xb97   : > { %2333 = vrcp.f32 %v1564_v8 }
 0xb98   : > { %v1678_v30 = vpop.xlane.xlu2 %1677 }
 0xb99   : > { %2335 = vrcp.f32 %v1678_v30 }
 0xb9d   : > { %v2334_v31 = vpop.eup %2333 }
 0xb9e   : > { %v1566_v32 = vmul.f32 %v2334_v31, %v2330_v21 }
 0xb9f   : > { %v2336_v33 = vpop.eup %2335 }
 0xba0   : > { %2178 = vst.msk [vmem:[%s2947_s5 + $0x10] sm:$0xff] %vm1334_vm6, %v1566_v32  ;;  %v1680_v18 = vmul.f32 %v2336_v33, %v2332_v23  ;;  %v2291_v34 = vpop.permute.xlu2 %2290 }
 0xba1   : > { %v2292_v35 = vunpack.i.l.bf16 %v2291_v34  ;;  %v2293_v17 = vunpack.i.h.bf16 %v2291_v34 }
 0xba2   : > { %2188 = vst.msk [vmem:[%s2947_s5 + $0x18] sm:$0xff] %vm1334_vm6, %v1680_v18  ;;  %2189 = vmatmul.msk.f32.vlgmr.msrb.gmra.mxu2 %vm1334_vm6, %v1680_v18 }
 0xba3   : > { %1592 = vmatpush.msrb.mxu3 %v2292_v35 }
 0xba5   : > { %1593 = vmatpush.msrb.mxu3 %v2293_v17 }
 0xba6   : > { %2179 = vmatmul.msk.f32.vlgmr.msrb.gmra.mxu3 %vm1334_vm6, %v1566_v32 }
 0xba8   : > { %v1717_v36 = vpop.permute.xlu2 %1716 }
 0xbae   : > { %v1719_v37 = vpop.permute.xlu1 %1718 }
 0xbaf   : > { %2190 = vmatpush.xpose.msk.msra.mxu3 %vm737_vm1, %v1719_v37 }
 0xbb0   : > { %v1601_v38 = vpop.permute.xlu2 %1600 }
 0xbb1   : > { %2182 = vmatpush.xpose.msk.msrb.mxu1 %vm737_vm1, %v1601_v38 }
 0xbb3   : > { %2191 = vmatpush.xpose.msk.msra.mxu3 %vm737_vm1, %v1717_v36 }
 0xbb6   : > { %v1715_v39 = vpop.permute.xlu1 %1714 }
 0xbb7   : > { %2192 = vmatpush.xpose.msk.msra.mxu3 %vm737_vm1, %v1715_v39 }
 0xbbb   : > { %2193 = vmatpush.xpose.msk.msra.mxu3 %vm737_vm1, %v1713_v40 }
 0xbbe   : > { %v1599_v12 = vpop.permute.xlu1 %1598 }
 0xbbf   : > { %2183 = vmatpush.xpose.msk.msrb.mxu1 %vm737_vm1, %v1599_v12 }
 0xc25   : > { %v1709_v42 = vpop.f32.mrf.mxu2 }
 0xc26   : > { %2194 = vmatmul.msk.f32.vlgmr.msra.gmra.mxu3 %vm737_vm1, %v1709_v42 }
 0xc29   : > { %v1595_v43 = vpop.f32.mrf.mxu3 }
 0xc2a   : > { %2184 = vmatmul.msk.f32.vlgmr.msrb.gmra.mxu1 %vm737_vm1, %v1595_v43 }
 0xca7   : > { %v1634_v45 = vpop.f32.mrf.mxu1 }
 0xca8   : > { %v1637_v46 = vadd.f32 %v1634_v45, %v1522_v44 }
 0xca9   : > { %v1748_v47 = vpop.f32.mrf.mxu3 }
 0xcaa   : > { %v1751_v49 = vadd.f32 %v1748_v47, %v1637_v46 }
 0xcac   : > { %v1752_v50 = vadd.f32 %v1751_v49, %v2881_v16  ;;  %v1787_v16 = vld [vmem:[%s3149_s13 + $0x10] sm:$0xff] }
 0xcad   : > { %2196 = vmatpush.xpose.msk.msra.mxu0 %vm668_vm0, %v1787_v16 }
 0xcae   : > { %v1753_v51 = vsel %vm668_vm0, %v1752_v50, 0.0 }
 0xcaf   : > { %1754 = vadd.xlane.f32.xlu2 %v1753_v51 }
 0xcb1   : > { %2197 = vmatpush.xpose.msk.msra.mxu0 %vm668_vm0, %v1786_v58 }
 0xcb5   : > { %2198 = vmatpush.xpose.msk.msra.mxu0 %vm668_vm0, %v1785_v59 }
 0xd22   : > { %v1755_v52 = vpop.xlane.xlu2 %1754 }
 0xd23   : > { %v1756_v53 = vmul.f32 %v1755_v52, %v2824_v48 }
 0xd25   : > { %v1757_v54 = vsub.f32 %v1752_v50, %v1756_v53 }
 0xd27   : > { %v1758_v55 = vmul.f32 %v1757_v54, %v1757_v54 }
 0xd29   : > { %v1759_v56 = vsel %vm668_vm0, %v1758_v55, 0.0 }
 0xd2a   : > { %1760 = vadd.xlane.f32.xlu0 %v1759_v56 }
 0xd9d   : > { %v1761_v62 = vpop.xlane.xlu0 %1760 }
 0xd9e   : > { %v1762_v63 = vmul.f32 %v1761_v62, %v2824_v48 }
 0xda0   : > { %v1763_v0 = vadd.f32 1e-05, %v1762_v63 }
 0xda2   : > { %2337 = vrsqrt.f32 %v1763_v0  ;;  %vm1770_vm8 = vweird.f32 %v1763_v0 }
 0xda8   : > { %v2338_v2 = vpop.eup %2337 }
 0xda9   : > { %v1765_v3 = vmul.f32 %v2338_v2, %v1763_v0  ;;  %vm1771_vm7 = vweird.f32 %v2338_v2 }
 0xdaa   : > { %vm1772_vm9 = vmor %vm1770_vm8, %vm1771_vm7 }
 0xdab   : > { %v1766_v4 = vmul.f32 %v2338_v2, %v1765_v3 }
 0xdad   : > { %v1767_v5 = vmul.f32 0.5, %v1766_v4 }
 0xdaf   : > { %v1768_v6 = vsub.f32 1.5, %v1767_v5 }
 0xdb1   : > { %v1769_v7 = vmul.f32 %v2338_v2, %v1768_v6 }
 0xdb3   : > { %v1773_v10 = vsel %vm1772_vm9, %v2338_v2, %v1769_v7 }
 0xdb4   : > { %v1774_v11 = vmul.f32 %v1773_v10, %v1757_v54 }
 0xdb6   : > { %v1779_v14 = vmul.f32 %v3055_v9, %v1774_v11 }
 0xdb8   : > { %v1784_v15 = vadd.f32 %v3060_v13, %v1779_v14 }
 0xdba   : > { %2199 = vmatmul.msk.f32.vlgmr.msra.gmra.mxu0 %vm668_vm0, %v1784_v15 }
 0xe37   : > { %v1825_v21 = vpop.f32.mrf.mxu0 }
 0xe38   : > { %v1826_v22 = vadd.f32 %v2299_v20, %v1825_v21 }
 0xe3a   : > { %v1828_v23 = vmax.f32 %v1826_v22, 0.0 }
 0xe3c   : > { %2204 = vmatmul.msk.f32.vlgmr.msra.gmra.mxu2 %vm668_vm0, %v1828_v23 }
 0xebf   : > { %v1869_v25 = vpop.f32.mrf.mxu2 }
 0xec0   : > { %v1870_v26 = vadd.f32 %v2300_v24, %v1869_v25 }
 0xec2   : > { %v1872_v27 = vadd.f32 %v1870_v26, %v1784_v15 }
 0xec4   : > { %v1873_v28 = vsel %vm668_vm0, %v1872_v27, 0.0 }
 0xec5   : > { %1874 = vadd.xlane.f32.xlu1 %v1873_v28 }
 0xf38   : > { %v1875_v29 = vpop.xlane.xlu1 %1874 }
 0xf39   : > { %v1876_v8 = vmul.f32 %v1875_v29, %v2824_v48 }
 0xf3b   : > { %v1877_v30 = vsub.f32 %v1872_v27, %v1876_v8 }
 0xf3d   : > { %v1878_v31 = vmul.f32 %v1877_v30, %v1877_v30 }
 0xf3f   : > { %v1879_v32 = vsel %vm668_vm0, %v1878_v31, 0.0 }
 0xf40   : > { %1880 = vadd.xlane.f32.xlu2 %v1879_v32 }
 0xf41   : > { %2368 = shalt.err (!%p2365_p3)
}
 0xf42   : > { %s2449_s27 = smov 128   ;;  %s2450_s4 = smov 8  }
 0xf43   : > { %2216 = dma.vmem_to_hbm [thread:$0]  (%p2589_p5), %s1924_s22, 512, %s1926_s6, %s1903_s7, %s2449_s27, %s2449_s27, %s2450_s4  }
 0xf44   : > { %s1940_s24 = sshll.u32 %s2947_s5, 4  ;;  %s1942_s26 = sshll.u32 %s1939_s20, 4  ;;  %s1941_s24 = int_to_ptr.vmem [resolvable:$true] %s1940_s24  ;;  %s1943_s26 = int_to_ptr.hbm [resolvable:$true] %s1942_s26 }
 0xf45   : > { %s1908_s10 = scalar_lea.sflag [#allocation5], %s2723_s2  ;;  %s2383_s29 = sshra.s32 %s1943_s26, 4  ;;  %s2384_s29 = int_to_ptr.hbm [resolvable:$true] %s2383_s29 }
 0xf46   : > { %s2385_s8 = scalar_lea.hbm %s2384_s29, 32  ;;  %s2389_s1 = scalar_lea.hbm %s3155_s19, 64 }
 0xf47   : > { %p2386_p4 = scmp.ne.s32.totalorder %s2384_s29, %s2385_s8  ;;  %p2390_p9 = scmp.lt.s32.totalorder %s2384_s29, %s3155_s19 }
 0xf48   : > { %p2391_p10 = scmp.lt.s32.totalorder %s2389_s1, %s2385_s8 }
 0xf49   : > { %p2387_p7 = pnand %p2386_p4, %p2589_p5 }
 0xf4a   : > { %p2392_p11 = por %p2391_p10, %p2390_p9 }
 0xf4b   : > { %p2388_p8 = pneg %p2387_p7 }
 0xf4d   : > { %p2393_p12 = pnand %p2392_p11, %p2388_p8 }
 0xf4f   : > { %2396 = shalt.err (!%p2393_p12)
}
 0xf50   : > { %2217 = dma.vmem_to_hbm [thread:$0]  (%p2589_p5), %s1941_s24, 512, %s1943_s26, %s1908_s10, %s2449_s27, %s2449_s27, %s2450_s4  }
 0xf51   : > { %s3210_s6 = sshll.u32 %s2640_s23, 3 }
 0xf52   : > { %s652_s2 = scalar_lea.vmem %s3153_s17, %s3210_s6 }
 0xfb3   : > { %v1881_v33 = vpop.xlane.xlu2 %1880 }
 0xfb4   : > { %v1882_v18 = vmul.f32 %v1881_v33, %v2824_v48 }
 0xfb6   : > { %v1883_v34 = vadd.f32 1e-05, %v1882_v18 }
 0xfb8   : > { %2339 = vrsqrt.f32 %v1883_v34  ;;  %vm1890_vm11 = vweird.f32 %v1883_v34 }
 0xfbe   : > { %v2340_v35 = vpop.eup %2339 }
 0xfbf   : > { %v1885_v17 = vmul.f32 %v2340_v35, %v1883_v34  ;;  %vm1891_vm10 = vweird.f32 %v2340_v35 }
 0xfc0   : > { %vm1892_vm12 = vmor %vm1890_vm11, %vm1891_vm10 }
 0xfc1   : > { %v1886_v36 = vmul.f32 %v2340_v35, %v1885_v17 }
 0xfc3   : > { %v1887_v37 = vmul.f32 0.5, %v1886_v36 }
 0xfc5   : > { %v1888_v38 = vsub.f32 1.5, %v1887_v37 }
 0xfc7   : > { %v1889_v39 = vmul.f32 %v2340_v35, %v1888_v38 }
 0xfc9   : > { %v1893_v40 = vsel %vm1892_vm12, %v2340_v35, %v1889_v39 }
 0xfca   : > { %v1894_v12 = vmul.f32 %v1893_v40, %v1877_v30 }
 0xfcc   : > { %v1895_v41 = vmul.f32 %v3055_v9, %v1894_v12 }
 0xfce   : > { %v1896_v48 = vadd.f32 %v3060_v13, %v1895_v41 }
 0xfd0   : > { %1897 = vst.msk [vmem:[%s652_s2] sm:$0xff] %vm668_vm0, %v1896_v48 }
 0xfd1 PF: > { %p2227_p5 = scmp.ge.s32.totalorder %s2435_s21, 2  ;;  %s1964_s20 = sand.u32 1, %s2423_s0  }
 0xfd2   : > { %s1965_s22 = scalar_lea.sflag [#allocation3], %s1964_s20 }
 0xfd3   : > { %p2221_p13 = pnand %p2227_p5, %p2593_p6 }
 0xfd5   : > { %p2222_p0 = pneg %p2221_p13 }
 0xfd7   : > { %2414 = dma.done.wait (%p2222_p0), %s1965_s22, 512  }
 0xfd8   : > { %2416 = vsyncadd (%p2222_p0), %s1965_s22, 4294966784  ;;  %s1975_s23 = scalar_lea.sflag [#allocation5], %s1964_s20 }
 0xfd9   : > { %2418 = dma.done.wait (%p2222_p0), %s1975_s23, 512  }
 0xfda   : > { %2420 = vsyncadd (%p2222_p0), %s1975_s23, 4294966784  ;;  %s3212_s21 = sld [smem:[#allocation9_spill]]  ;;  %s3215_s0 = smov %s2427_s30 }
 0xfdb   : > { %s3213_s27 = sld [smem:[#allocation8_spill]] }
 0xfdc   : > { %s3214_s20 = sld [smem:[#allocation10_spill]] }
 0xfe0   : > { %p33_p1 = scmp.ge.s32.totalorder %s3212_s21, 4  }
 0xfe1   : > { %s3216_s30 = smov %s3213_s27 }
 0xfe2   :  { %35 = sbr.rel (!%p33_p1) target bundleno = 18 (0x12), region = 164 }
 0xfe7   :  { %1981 = vsyncpa [#allocation3], 1 }
 0xfe8   :  { %1983 = vsyncpa [#allocation3 + $0x1], 1 }
 0xfe9   :  { %1984 = vsyncpa [#allocation5], 1 }
 0xfea   :  { %1986 = vsyncpa [#allocation5 + $0x1], 1 }

</bundles_post_ra>
